<compile_context>
chip_gen: v7x
topology: tpu7x:2x2x1
jax: 0.10.0
libtpu: 0.0.40
codegen_flags: <defaults>
</compile_context>

<pallas_src>
import functools

import jax
import jax.numpy as jnp
from jax.experimental import pallas as pl
from jax.experimental.pallas import tpu as pltpu


# --------------------------------------------------------------------------- #
# Pallas kernel: fused 2-layer RGCN encoder
# --------------------------------------------------------------------------- #
def _rgcn_fused_kernel(a_ref, x_ref, w1_ref, bias1_ref, w2_ref, bias2_ref,
                       o_ref, xw_ref, *, num_rel, n_pad, hp):
    # a_ref : (Np, (R+1)*Np)  blocks 0..R-1 = normalized A_r, block R = I
    # x_ref : (Np, Hp)
    # w*    : (Hp, (R+1)*Hp)  blocks 0..R-1 = W_r, block R = root
    # xw_ref: ((R+1)*Np, Hp)  VMEM scratch
    rp1 = num_rel + 1

    def layer(x_val, w_ref, bias_ref, apply_relu):
        # Stream each relation's (and the root's) transform straight into the
        # scratch: no wide intermediate, no restack store/reload round-trip.
        for r in range(rp1):
            xw_ref[r * n_pad:(r + 1) * n_pad, :] = jnp.dot(
                x_val, w_ref[:, r * hp:(r + 1) * hp],
                preferred_element_type=jnp.float32)
        # Single lane-dense aggregation matmul, K = (R+1)*Np.  A's identity
        # block makes this also produce the self-loop (root) term.  A is read
        # here (per layer), not hoisted across layers.
        out = jnp.dot(a_ref[...], xw_ref[...],
                      preferred_element_type=jnp.float32)
        out += bias_ref[...]
        if apply_relu:
            out = jnp.maximum(out, 0.0)
        return out

    h = layer(x_ref[...], w1_ref, bias1_ref, True)
    # TODO(synk): F.dropout(p=0.2) is identity in eval mode; training-mode
    # dropout RNG is not reproduced here.
    o_ref[...] = layer(h, w2_ref, bias2_ref, False).astype(o_ref.dtype)


def rgcn_encoder_fused(a_ext, x, w1s, bias1, w2s, bias2,
                       *, num_rel, n_pad, hp):
    rp1 = num_rel + 1
    kernel = functools.partial(_rgcn_fused_kernel,
                               num_rel=num_rel, n_pad=n_pad, hp=hp)
    # Scheduler hint for XLA: two layers of (R+1) transform matmuls + one
    # aggregation matmul each.
    flops = 2 * (2 * n_pad * hp * hp * rp1 + 2 * n_pad * (rp1 * n_pad) * hp)
    bytes_accessed = 4 * (a_ext.size + x.size + w1s.size + w2s.size
                          + bias1.size + bias2.size + n_pad * hp)
    return pl.pallas_call(
        kernel,
        out_shape=jax.ShapeDtypeStruct((n_pad, hp), jnp.float32),
        grid=(1,),  # whole toy problem (<1 MiB) fits VMEM in one fused step
        in_specs=[
            pl.BlockSpec((n_pad, rp1 * n_pad), lambda i: (0, 0)),  # A_ext
            pl.BlockSpec((n_pad, hp), lambda i: (0, 0)),           # X
            pl.BlockSpec((hp, rp1 * hp), lambda i: (0, 0)),        # W1 (+root)
            pl.BlockSpec((1, hp), lambda i: (0, 0)),               # bias1
            pl.BlockSpec((hp, rp1 * hp), lambda i: (0, 0)),        # W2 (+root)
            pl.BlockSpec((1, hp), lambda i: (0, 0)),               # bias2
        ],
        out_specs=pl.BlockSpec((n_pad, hp), lambda i: (0, 0)),
        scratch_shapes=[pltpu.VMEM((rp1 * n_pad, hp), jnp.float32)],
        compiler_params=pltpu.CompilerParams(
            dimension_semantics=("arbitrary",),
            vmem_limit_bytes=32 * 1024 * 1024),
        cost_estimate=pl.CostEstimate(flops=flops, transcendentals=0,
                                      bytes_accessed=bytes_accessed),
    )(a_ext, x, w1s, bias1, w2s, bias2)


# --------------------------------------------------------------------------- #
# Glue: parameter init, basis expansion, lane-dense packing
# --------------------------------------------------------------------------- #
def glorot(key, shape):
    fan_in, fan_out = shape[-2], shape[-1]
    limit = (6.0 / (fan_in + fan_out)) ** 0.5
    return jax.random.uniform(key, shape, jnp.float32, -limit, limit)


def init_params(key, num_nodes, hidden, num_relations, num_bases):
    ks = jax.random.split(key, 8)
    params = {"node_emb": glorot(ks[0], (num_nodes, hidden))}
    for li, off in (("conv1", 1), ("conv2", 4)):
        params[li] = {
            "basis": glorot(ks[off + 0], (num_bases, hidden, hidden)),
            "comp": glorot(ks[off + 1], (num_relations, num_bases)),
            "root": glorot(ks[off + 2], (hidden, hidden)),
            "bias": jnp.zeros((hidden,), jnp.float32),
        }
    return params


def expand_basis(layer):
    # W_r = comp[r] @ basis  ->  (R, Hin, Hout)
    return jnp.einsum("rb,bio->rio", layer["comp"], layer["basis"])


def build_ext_adj(edge_index, edge_type, num_nodes, num_relations, n_pad):
    """Directly build (Np, (R+1)*Np): per-relation mean-normalized adjacency
    in lane blocks 0..R-1, identity (self-loop) in block R."""
    src, dst = edge_index[0], edge_index[1]
    counts = jnp.zeros((num_nodes, num_relations), jnp.float32)
    counts = counts.at[dst, edge_type].add(1.0)
    norm = 1.0 / jnp.clip(counts, 1.0, None)                    # (N, R)
    a = jnp.zeros((n_pad, (num_relations + 1) * n_pad), jnp.float32)
    a = a.at[dst, edge_type * n_pad + src].add(norm[dst, edge_type])
    rows = jnp.arange(n_pad)
    a = a.at[rows, num_relations * n_pad + rows].set(1.0)       # identity block
    return a


def stack_layer_params(layer, hidden, hp, num_relations):
    w = expand_basis(layer)                                      # (R, H, H)
    w = jnp.concatenate([w, layer["root"][None]], axis=0)        # fold root -> (R+1, H, H)
    w = jnp.pad(w, ((0, 0), (0, hp - hidden), (0, hp - hidden)))
    # (R+1, Hp, Hp) -> (Hp, (R+1)*Hp): W'[:, r*Hp:(r+1)*Hp] = W_r, last = root
    w_stacked = jnp.transpose(w, (1, 0, 2)).reshape(hp, (num_relations + 1) * hp)
    bias = jnp.pad(layer["bias"], (0, hp - hidden)).reshape(1, hp)
    return w_stacked, bias


def rgcn_encoder_forward(params, edge_index, edge_type, num_relations):
    x = params["node_emb"]
    n, h = x.shape
    n_pad = -(-n // 8) * 8                          # sublane multiple
    hp = max(128, -(-h // 128) * 128)               # lane-dense hidden
    a_ext = build_ext_adj(edge_index, edge_type, n, num_relations, n_pad)
    x_pad = jnp.pad(x, ((0, n_pad - n), (0, hp - h)))
    w1, b1 = stack_layer_params(params["conv1"], h, hp, num_relations)
    w2, b2 = stack_layer_params(params["conv2"], h, hp, num_relations)
    out = rgcn_encoder_fused(a_ext, x_pad, w1, b1, w2, b2,
                             num_rel=num_relations, n_pad=n_pad, hp=hp)
    return out[:n, :h]


# --------------------------------------------------------------------------- #
# Pure-JAX edge-wise reference (faithful to FastRGCNConv) for validation
# --------------------------------------------------------------------------- #
def reference_layer(x, edge_index, edge_type, weight, root, bias, num_relations,
                    apply_relu):
    src, dst = edge_index[0], edge_index[1]
    n = x.shape[0]
    msg = jnp.einsum("eh,eho->eo", x[src], weight[edge_type])
    counts = jnp.zeros((n, num_relations), jnp.float32).at[dst, edge_type].add(1.0)
    norm = 1.0 / jnp.clip(counts, 1.0, None)
    msg = msg * norm[dst, edge_type][:, None]
    agg = jnp.zeros((n, x.shape[1]), jnp.float32).at[dst].add(msg)
    out = agg + x @ root + bias
    return jnp.maximum(out, 0.0) if apply_relu else out


def reference_forward(params, edge_index, edge_type, num_relations):
    x = params["node_emb"]
    x = reference_layer(x, edge_index, edge_type, expand_basis(params["conv1"]),
                        params["conv1"]["root"], params["conv1"]["bias"],
                        num_relations, True)
    x = reference_layer(x, edge_index, edge_type, expand_basis(params["conv2"]),
                        params["conv2"]["root"], params["conv2"]["bias"],
                        num_relations, False)
    return x


if __name__ == "__main__":
    NUM_NODES = 64
    HIDDEN = 32
    NUM_RELATIONS = 4
    NUM_BASES = 8
    NUM_EDGES = 256

    key = jax.random.PRNGKey(0)
    k_params, k_src, k_dst, k_type = jax.random.split(key, 4)

    params = init_params(k_params, NUM_NODES, HIDDEN, NUM_RELATIONS, NUM_BASES)
    src = jax.random.randint(k_src, (NUM_EDGES,), 0, NUM_NODES, jnp.int32)
    dst = jax.random.randint(k_dst, (NUM_EDGES,), 0, NUM_NODES, jnp.int32)
    edge_index = jnp.stack([src, dst], axis=0)            # (2, E)
    edge_type = jax.random.randint(k_type, (NUM_EDGES,), 0, NUM_RELATIONS, jnp.int32)

    out = rgcn_encoder_forward(params, edge_index, edge_type, NUM_RELATIONS)
    out = jax.block_until_ready(out)

    ref = reference_forward(params, edge_index, edge_type, NUM_RELATIONS)
    assert out.shape == (NUM_NODES, HIDDEN) and out.dtype == jnp.float32
    assert jnp.allclose(out, ref, atol=2e-3, rtol=2e-3)

    print("KERNEL_OK")
</pallas_src>

<mosaic_0001>
module attributes {stable_mosaic.version = 11 : i64} {
  func.func @_rgcn_fused_kernel(%arg0: i32, %arg1: memref<64x320xf32, #tpu.memory_space<vmem>>, %arg2: memref<64x128xf32, #tpu.memory_space<vmem>>, %arg3: memref<128x640xf32, #tpu.memory_space<vmem>>, %arg4: memref<1x128xf32, #tpu.memory_space<vmem>>, %arg5: memref<128x640xf32, #tpu.memory_space<vmem>>, %arg6: memref<1x128xf32, #tpu.memory_space<vmem>>, %arg7: memref<64x128xf32, #tpu.memory_space<vmem>>, %arg8: memref<320x128xf32, #tpu.memory_space<vmem>>) attributes {dimension_semantics = [#tpu.dimension_semantics<arbitrary>], iteration_bounds = array<i64: 1>, scalar_prefetch = 0 : i64, scratch_operands = 1 : i64, tpu.core_type = #tpu.core_type<tc>, window_params = [{pipeline_mode = #tpu.pipeline_mode<synchronous>, transform_indices = @transform_0, window_bounds = array<i64: 64, 320>}, {pipeline_mode = #tpu.pipeline_mode<synchronous>, transform_indices = @transform_1, window_bounds = array<i64: 64, 128>}, {pipeline_mode = #tpu.pipeline_mode<synchronous>, transform_indices = @transform_2, window_bounds = array<i64: 128, 640>}, {pipeline_mode = #tpu.pipeline_mode<synchronous>, transform_indices = @transform_3, window_bounds = array<i64: 1, 128>}, {pipeline_mode = #tpu.pipeline_mode<synchronous>, transform_indices = @transform_4, window_bounds = array<i64: 128, 640>}, {pipeline_mode = #tpu.pipeline_mode<synchronous>, transform_indices = @transform_5, window_bounds = array<i64: 1, 128>}, {pipeline_mode = #tpu.pipeline_mode<synchronous>, transform_indices = @transform_6, window_bounds = array<i64: 64, 128>}]} {
    %c0 = arith.constant 0 : index
    %c0_0 = arith.constant 0 : index
    %0 = vector.load %arg2[%c0, %c0_0] : memref<64x128xf32, #tpu.memory_space<vmem>>, vector<64x128xf32>
    %c0_1 = arith.constant 0 : index
    %c0_2 = arith.constant 0 : index
    %1 = vector.load %arg3[%c0_1, %c0_2] : memref<128x640xf32, #tpu.memory_space<vmem>>, vector<128x128xf32>
    %cst = arith.constant dense<0.000000e+00> : vector<64x128xf32>
    %2 = tpu.matmul %0, %1, %cst {dimension_numbers = #tpu.dot_dimension_numbers<[1], [0], [0], [1], [0, 0, 1, 1], [], []>} : vector<64x128xf32>, vector<128x128xf32>, vector<64x128xf32> -> vector<64x128xf32>
    %c0_3 = arith.constant 0 : index
    %c0_4 = arith.constant 0 : index
    %3 = vector.load %arg8[%c0_3, %c0_4] : memref<320x128xf32, #tpu.memory_space<vmem>>, vector<64x128xf32>
    tpu.vector_store %arg8[%c0_3, %c0_4], %2 {strides = array<i32>} : memref<320x128xf32, #tpu.memory_space<vmem>>, vector<64x128xf32>,
    %c0_5 = arith.constant 0 : index
    %c128 = arith.constant 128 : index
    %4 = vector.load %arg3[%c0_5, %c128] : memref<128x640xf32, #tpu.memory_space<vmem>>, vector<128x128xf32>
    %cst_6 = arith.constant dense<0.000000e+00> : vector<64x128xf32>
    %5 = tpu.matmul %0, %4, %cst_6 {dimension_numbers = #tpu.dot_dimension_numbers<[1], [0], [0], [1], [0, 0, 1, 1], [], []>} : vector<64x128xf32>, vector<128x128xf32>, vector<64x128xf32> -> vector<64x128xf32>
    %c64 = arith.constant 64 : index
    %c0_7 = arith.constant 0 : index
    %6 = vector.load %arg8[%c64, %c0_7] : memref<320x128xf32, #tpu.memory_space<vmem>>, vector<64x128xf32>
    tpu.vector_store %arg8[%c64, %c0_7], %5 {strides = array<i32>} : memref<320x128xf32, #tpu.memory_space<vmem>>, vector<64x128xf32>,
    %c0_8 = arith.constant 0 : index
    %c256 = arith.constant 256 : index
    %7 = vector.load %arg3[%c0_8, %c256] : memref<128x640xf32, #tpu.memory_space<vmem>>, vector<128x128xf32>
    %cst_9 = arith.constant dense<0.000000e+00> : vector<64x128xf32>
    %8 = tpu.matmul %0, %7, %cst_9 {dimension_numbers = #tpu.dot_dimension_numbers<[1], [0], [0], [1], [0, 0, 1, 1], [], []>} : vector<64x128xf32>, vector<128x128xf32>, vector<64x128xf32> -> vector<64x128xf32>
    %c128_10 = arith.constant 128 : index
    %c0_11 = arith.constant 0 : index
    %9 = vector.load %arg8[%c128_10, %c0_11] : memref<320x128xf32, #tpu.memory_space<vmem>>, vector<64x128xf32>
    tpu.vector_store %arg8[%c128_10, %c0_11], %8 {strides = array<i32>} : memref<320x128xf32, #tpu.memory_space<vmem>>, vector<64x128xf32>,
    %c0_12 = arith.constant 0 : index
    %c384 = arith.constant 384 : index
    %10 = vector.load %arg3[%c0_12, %c384] : memref<128x640xf32, #tpu.memory_space<vmem>>, vector<128x128xf32>
    %cst_13 = arith.constant dense<0.000000e+00> : vector<64x128xf32>
    %11 = tpu.matmul %0, %10, %cst_13 {dimension_numbers = #tpu.dot_dimension_numbers<[1], [0], [0], [1], [0, 0, 1, 1], [], []>} : vector<64x128xf32>, vector<128x128xf32>, vector<64x128xf32> -> vector<64x128xf32>
    %c192 = arith.constant 192 : index
    %c0_14 = arith.constant 0 : index
    %12 = vector.load %arg8[%c192, %c0_14] : memref<320x128xf32, #tpu.memory_space<vmem>>, vector<64x128xf32>
    tpu.vector_store %arg8[%c192, %c0_14], %11 {strides = array<i32>} : memref<320x128xf32, #tpu.memory_space<vmem>>, vector<64x128xf32>,
    %c0_15 = arith.constant 0 : index
    %c512 = arith.constant 512 : index
    %13 = vector.load %arg3[%c0_15, %c512] : memref<128x640xf32, #tpu.memory_space<vmem>>, vector<128x128xf32>
    %cst_16 = arith.constant dense<0.000000e+00> : vector<64x128xf32>
    %14 = tpu.matmul %0, %13, %cst_16 {dimension_numbers = #tpu.dot_dimension_numbers<[1], [0], [0], [1], [0, 0, 1, 1], [], []>} : vector<64x128xf32>, vector<128x128xf32>, vector<64x128xf32> -> vector<64x128xf32>
    %c256_17 = arith.constant 256 : index
    %c0_18 = arith.constant 0 : index
    %15 = vector.load %arg8[%c256_17, %c0_18] : memref<320x128xf32, #tpu.memory_space<vmem>>, vector<64x128xf32>
    tpu.vector_store %arg8[%c256_17, %c0_18], %14 {strides = array<i32>} : memref<320x128xf32, #tpu.memory_space<vmem>>, vector<64x128xf32>,
    %c0_19 = arith.constant 0 : index
    %c0_20 = arith.constant 0 : index
    %16 = vector.load %arg1[%c0_19, %c0_20] : memref<64x320xf32, #tpu.memory_space<vmem>>, vector<64x320xf32>
    %c0_21 = arith.constant 0 : index
    %c0_22 = arith.constant 0 : index
    %17 = vector.load %arg8[%c0_21, %c0_22] : memref<320x128xf32, #tpu.memory_space<vmem>>, vector<320x128xf32>
    %cst_23 = arith.constant dense<0.000000e+00> : vector<64x128xf32>
    %18 = tpu.matmul %16, %17, %cst_23 {dimension_numbers = #tpu.dot_dimension_numbers<[1], [0], [0], [1], [0, 0, 1, 1], [], []>} : vector<64x320xf32>, vector<320x128xf32>, vector<64x128xf32> -> vector<64x128xf32>
    %c0_24 = arith.constant 0 : index
    %c0_25 = arith.constant 0 : index
    %19 = vector.load %arg4[%c0_24, %c0_25] : memref<1x128xf32, #tpu.memory_space<vmem>>, vector<1x128xf32>
    %20 = vector.broadcast %19 : vector<1x128xf32> to vector<64x128xf32>
    %21 = arith.addf %18, %20 : vector<64x128xf32>
    %cst_26 = arith.constant 0.000000e+00 : f32
    %22 = vector.broadcast %cst_26 : f32 to vector<64x128xf32>
    %23 = arith.maximumf %21, %22 : vector<64x128xf32>
    %c0_27 = arith.constant 0 : index
    %c0_28 = arith.constant 0 : index
    %24 = vector.load %arg5[%c0_27, %c0_28] : memref<128x640xf32, #tpu.memory_space<vmem>>, vector<128x128xf32>
    %cst_29 = arith.constant dense<0.000000e+00> : vector<64x128xf32>
    %25 = tpu.matmul %23, %24, %cst_29 {dimension_numbers = #tpu.dot_dimension_numbers<[1], [0], [0], [1], [0, 0, 1, 1], [], []>} : vector<64x128xf32>, vector<128x128xf32>, vector<64x128xf32> -> vector<64x128xf32>
    %c0_30 = arith.constant 0 : index
    %c0_31 = arith.constant 0 : index
    %26 = vector.load %arg8[%c0_30, %c0_31] : memref<320x128xf32, #tpu.memory_space<vmem>>, vector<64x128xf32>
    tpu.vector_store %arg8[%c0_30, %c0_31], %25 {strides = array<i32>} : memref<320x128xf32, #tpu.memory_space<vmem>>, vector<64x128xf32>,
    %c0_32 = arith.constant 0 : index
    %c128_33 = arith.constant 128 : index
    %27 = vector.load %arg5[%c0_32, %c128_33] : memref<128x640xf32, #tpu.memory_space<vmem>>, vector<128x128xf32>
    %cst_34 = arith.constant dense<0.000000e+00> : vector<64x128xf32>
    %28 = tpu.matmul %23, %27, %cst_34 {dimension_numbers = #tpu.dot_dimension_numbers<[1], [0], [0], [1], [0, 0, 1, 1], [], []>} : vector<64x128xf32>, vector<128x128xf32>, vector<64x128xf32> -> vector<64x128xf32>
    %c64_35 = arith.constant 64 : index
    %c0_36 = arith.constant 0 : index
    %29 = vector.load %arg8[%c64_35, %c0_36] : memref<320x128xf32, #tpu.memory_space<vmem>>, vector<64x128xf32>
    tpu.vector_store %arg8[%c64_35, %c0_36], %28 {strides = array<i32>} : memref<320x128xf32, #tpu.memory_space<vmem>>, vector<64x128xf32>,
    %c0_37 = arith.constant 0 : index
    %c256_38 = arith.constant 256 : index
    %30 = vector.load %arg5[%c0_37, %c256_38] : memref<128x640xf32, #tpu.memory_space<vmem>>, vector<128x128xf32>
    %cst_39 = arith.constant dense<0.000000e+00> : vector<64x128xf32>
    %31 = tpu.matmul %23, %30, %cst_39 {dimension_numbers = #tpu.dot_dimension_numbers<[1], [0], [0], [1], [0, 0, 1, 1], [], []>} : vector<64x128xf32>, vector<128x128xf32>, vector<64x128xf32> -> vector<64x128xf32>
    %c128_40 = arith.constant 128 : index
    %c0_41 = arith.constant 0 : index
    %32 = vector.load %arg8[%c128_40, %c0_41] : memref<320x128xf32, #tpu.memory_space<vmem>>, vector<64x128xf32>
    tpu.vector_store %arg8[%c128_40, %c0_41], %31 {strides = array<i32>} : memref<320x128xf32, #tpu.memory_space<vmem>>, vector<64x128xf32>,
    %c0_42 = arith.constant 0 : index
    %c384_43 = arith.constant 384 : index
    %33 = vector.load %arg5[%c0_42, %c384_43] : memref<128x640xf32, #tpu.memory_space<vmem>>, vector<128x128xf32>
    %cst_44 = arith.constant dense<0.000000e+00> : vector<64x128xf32>
    %34 = tpu.matmul %23, %33, %cst_44 {dimension_numbers = #tpu.dot_dimension_numbers<[1], [0], [0], [1], [0, 0, 1, 1], [], []>} : vector<64x128xf32>, vector<128x128xf32>, vector<64x128xf32> -> vector<64x128xf32>
    %c192_45 = arith.constant 192 : index
    %c0_46 = arith.constant 0 : index
    %35 = vector.load %arg8[%c192_45, %c0_46] : memref<320x128xf32, #tpu.memory_space<vmem>>, vector<64x128xf32>
    tpu.vector_store %arg8[%c192_45, %c0_46], %34 {strides = array<i32>} : memref<320x128xf32, #tpu.memory_space<vmem>>, vector<64x128xf32>,
    %c0_47 = arith.constant 0 : index
    %c512_48 = arith.constant 512 : index
    %36 = vector.load %arg5[%c0_47, %c512_48] : memref<128x640xf32, #tpu.memory_space<vmem>>, vector<128x128xf32>
    %cst_49 = arith.constant dense<0.000000e+00> : vector<64x128xf32>
    %37 = tpu.matmul %23, %36, %cst_49 {dimension_numbers = #tpu.dot_dimension_numbers<[1], [0], [0], [1], [0, 0, 1, 1], [], []>} : vector<64x128xf32>, vector<128x128xf32>, vector<64x128xf32> -> vector<64x128xf32>
    %c256_50 = arith.constant 256 : index
    %c0_51 = arith.constant 0 : index
    %38 = vector.load %arg8[%c256_50, %c0_51] : memref<320x128xf32, #tpu.memory_space<vmem>>, vector<64x128xf32>
    tpu.vector_store %arg8[%c256_50, %c0_51], %37 {strides = array<i32>} : memref<320x128xf32, #tpu.memory_space<vmem>>, vector<64x128xf32>,
    %c0_52 = arith.constant 0 : index
    %c0_53 = arith.constant 0 : index
    %39 = vector.load %arg1[%c0_52, %c0_53] : memref<64x320xf32, #tpu.memory_space<vmem>>, vector<64x320xf32>
    %c0_54 = arith.constant 0 : index
    %c0_55 = arith.constant 0 : index
    %40 = vector.load %arg8[%c0_54, %c0_55] : memref<320x128xf32, #tpu.memory_space<vmem>>, vector<320x128xf32>
    %cst_56 = arith.constant dense<0.000000e+00> : vector<64x128xf32>
    %41 = tpu.matmul %39, %40, %cst_56 {dimension_numbers = #tpu.dot_dimension_numbers<[1], [0], [0], [1], [0, 0, 1, 1], [], []>} : vector<64x320xf32>, vector<320x128xf32>, vector<64x128xf32> -> vector<64x128xf32>
    %c0_57 = arith.constant 0 : index
    %c0_58 = arith.constant 0 : index
    %42 = vector.load %arg6[%c0_57, %c0_58] : memref<1x128xf32, #tpu.memory_space<vmem>>, vector<1x128xf32>
    %43 = vector.broadcast %42 : vector<1x128xf32> to vector<64x128xf32>
    %44 = arith.addf %41, %43 : vector<64x128xf32>
    %c0_59 = arith.constant 0 : index
    %c0_60 = arith.constant 0 : index
    %45 = vector.load %arg7[%c0_59, %c0_60] : memref<64x128xf32, #tpu.memory_space<vmem>>, vector<64x128xf32>
    tpu.vector_store %arg7[%c0_59, %c0_60], %44 {strides = array<i32>} : memref<64x128xf32, #tpu.memory_space<vmem>>, vector<64x128xf32>,
    return
  }
  func.func @transform_0(%arg0: i32) -> (i32, i32) {
    %c0_i32 = arith.constant 0 : i32
    %c0_i32_0 = arith.constant 0 : i32
    %c0_i32_1 = arith.constant 0 : i32
    return %c0_i32, %c0_i32_0 : i32, i32
  }
  func.func @transform_1(%arg0: i32) -> (i32, i32) {
    %c0_i32 = arith.constant 0 : i32
    %c0_i32_0 = arith.constant 0 : i32
    %c0_i32_1 = arith.constant 0 : i32
    return %c0_i32, %c0_i32_0 : i32, i32
  }
  func.func @transform_2(%arg0: i32) -> (i32, i32) {
    %c0_i32 = arith.constant 0 : i32
    %c0_i32_0 = arith.constant 0 : i32
    %c0_i32_1 = arith.constant 0 : i32
    return %c0_i32, %c0_i32_0 : i32, i32
  }
  func.func @transform_3(%arg0: i32) -> (i32, i32) {
    %c0_i32 = arith.constant 0 : i32
    %c0_i32_0 = arith.constant 0 : i32
    %c0_i32_1 = arith.constant 0 : i32
    return %c0_i32, %c0_i32_0 : i32, i32
  }
  func.func @transform_4(%arg0: i32) -> (i32, i32) {
    %c0_i32 = arith.constant 0 : i32
    %c0_i32_0 = arith.constant 0 : i32
    %c0_i32_1 = arith.constant 0 : i32
    return %c0_i32, %c0_i32_0 : i32, i32
  }
  func.func @transform_5(%arg0: i32) -> (i32, i32) {
    %c0_i32 = arith.constant 0 : i32
    %c0_i32_0 = arith.constant 0 : i32
    %c0_i32_1 = arith.constant 0 : i32
    return %c0_i32, %c0_i32_0 : i32, i32
  }
  func.func @transform_6(%arg0: i32) -> (i32, i32) {
    %c0_i32 = arith.constant 0 : i32
    %c0_i32_0 = arith.constant 0 : i32
    %c0_i32_1 = arith.constant 0 : i32
    return %c0_i32, %c0_i32_0 : i32, i32
  }
}

</mosaic_0001>

<bundles_post_ra>
// kernel: tpu_custom_call.1
= control target key start
LH: loop header
LB: loop body
LE: loop exit
PB: predicated region body
PF: predicated region fallthrough
CT: control target
= control target key end

     0   :  { %11 = vsyncpa [#allocation4], 0  ;;  %s3818_s0 = inlined_call_operand.hbm [shape: f32[64,320], index: 0, kind: input, shape index: {}]   ;;  %s3819_s1 = inlined_call_operand.hbm [shape: f32[64,128], index: 1, kind: input, shape index: {}]   ;;  %s3820_s2 = inlined_call_operand.hbm [shape: f32[128,640], index: 2, kind: input, shape index: {}]   ;;  %s3821_s3 = inlined_call_operand.vmem [shape: f32[1,128], index: 3, kind: input, shape index: {}]   ;;  %s3822_s4 = inlined_call_operand.hbm [shape: f32[128,640], index: 4, kind: input, shape index: {}]   ;;  %s3823_s5 = inlined_call_operand.vmem [shape: f32[1,128], index: 5, kind: input, shape index: {}]   ;;  %s3824_s6 = inlined_call_operand.hbm [shape: f32[64,128], index: 6, kind: output, shape index: {}]  }
   0x1   :  { %12 = vsyncpa [#allocation7], 0 }
   0x2   :  { %13 = vsyncpa [#allocation10], 0 }
   0x3   :  { %14 = vsyncpa [#allocation5], 0  ;;  %s3466_s21 = smov [#allocation6]   ;;  %s3348_s25 = scalar_lea.hbm %s3819_s1, 1024 }
   0x4   :  { %s32_s22 = sshll.u32 %s3466_s21, 4  ;;  %p3349_p0 = scmp.ne.s32.totalorder %s3819_s1, %s3348_s25  ;;  %s33_s22 = int_to_ptr.vmem [resolvable:$true] %s32_s22 }
   0x5   :  { %p3352_p1 = scmp.lt.u32.totalorder %s3348_s25, %s3819_s1 }
   0x7   :  { %p3354_p2 = pnand %p3352_p1, %p3349_p0 }
   0x9   :  { %3357 = shalt.err (!%p3354_p2)
}
   0xa   :  { %s3358_s30 = scalar_lea.vmem %s33_s22, 1024  ;;  %p3363_p4 = scmp.lt.s32.totalorder %s33_s22, %s33_s22 }
   0xb   :  { %p3359_p3 = scmp.ne.s32.totalorder %s33_s22, %s3358_s30  ;;  %p3364_p5 = scmp.lt.s32.totalorder %s3358_s30, %s3358_s30 }
   0xd   :  { %p3365_p6 = por %p3364_p5, %p3363_p4 }
   0xf   :  { %p3366_p7 = pnand %p3365_p6, %p3359_p3 }
  0x11   :  { %3369 = shalt.err (!%p3366_p7)
}
  0x12   :  { %s3467_s7 = smov 128   ;;  %s3468_s8 = smov 8  }
  0x13   :  { %38 = dma.hbm_to_vmem [thread:$0]  %s3819_s1, 1024, %s33_s22, [#allocation7], %s3467_s7, %s3467_s7, %s3468_s8  }
  0x14   :  { %s3469_s11 = smov [#allocation3]   ;;  %s3370_s15 = scalar_lea.hbm %s3818_s0, 3072 }
  0x15   :  { %s20_s12 = sshll.u32 %s3469_s11, 4  ;;  %p3371_p8 = scmp.ne.s32.totalorder %s3818_s0, %s3370_s15  ;;  %s21_s12 = int_to_ptr.vmem [resolvable:$true] %s20_s12 }
  0x16   :  { %p3374_p9 = scmp.lt.u32.totalorder %s3370_s15, %s3818_s0 }
  0x18   :  { %p3376_p10 = pnand %p3374_p9, %p3371_p8 }
  0x1a   :  { %3379 = shalt.err (!%p3376_p10)
}
  0x1b   :  { %s3380_s20 = scalar_lea.vmem %s21_s12, 3072  ;;  %p3385_p12 = scmp.lt.s32.totalorder %s21_s12, %s21_s12 }
  0x1c   :  { %p3381_p11 = scmp.ne.s32.totalorder %s21_s12, %s3380_s20  ;;  %p3386_p13 = scmp.lt.s32.totalorder %s3380_s20, %s3380_s20 }
  0x1e   :  { %p3387_p0 = por %p3386_p13, %p3385_p12 }
  0x20   :  { %p3388_p1 = pnand %p3387_p0, %p3381_p11 }
  0x22   :  { %3391 = shalt.err (!%p3388_p1)
}
  0x23   :  { %s3470_s1 = smov 384   ;;  %s3471_s21 = smov 24  }
  0x24   :  { %26 = dma.hbm_to_vmem [thread:$0]  %s3818_s0, 3072, %s21_s12, [#allocation4], %s3470_s1, %s3470_s1, %s3471_s21  }
  0x25   :  { %s3472_s24 = smov [#allocation8]   ;;  %s3392_s28 = scalar_lea.hbm %s3820_s2, 10240 }
  0x26   :  { %s44_s25 = sshll.u32 %s3472_s24, 4  ;;  %p3393_p2 = scmp.ne.s32.totalorder %s3820_s2, %s3392_s28  ;;  %s45_s25 = int_to_ptr.vmem [resolvable:$true] %s44_s25 }
  0x27   :  { %p3396_p3 = scmp.lt.u32.totalorder %s3392_s28, %s3820_s2 }
  0x29   :  { %p3398_p4 = pnand %p3396_p3, %p3393_p2 }
  0x2b   :  { %3401 = shalt.err (!%p3398_p4)
}
  0x2c   :  { %s3402_s11 = scalar_lea.vmem %s45_s25, 10240  ;;  %p3407_p6 = scmp.lt.s32.totalorder %s45_s25, %s45_s25 }
  0x2d   :  { %p3403_p5 = scmp.ne.s32.totalorder %s45_s25, %s3402_s11  ;;  %p3408_p7 = scmp.lt.s32.totalorder %s3402_s11, %s3402_s11 }
  0x2f   :  { %p3409_p8 = por %p3408_p7, %p3407_p6 }
  0x31   :  { %p3410_p9 = pnand %p3409_p8, %p3403_p5 }
  0x33   :  { %3413 = shalt.err (!%p3410_p9)
}
  0x34   :  { %s3473_s0 = smov 640   ;;  %s3474_s12 = smov 40  }
  0x35   :  { %50 = dma.hbm_to_vmem [thread:$0]  %s3820_s2, 10240, %s45_s25, [#allocation7], %s3473_s0, %s3473_s0, %s3474_s12  }
  0x36   :  { %s3475_s15 = smov [#allocation9]   ;;  %s3414_s19 = scalar_lea.hbm %s3822_s4, 10240 }
  0x37   :  { %s58_s16 = sshll.u32 %s3475_s15, 4  ;;  %p3415_p10 = scmp.ne.s32.totalorder %s3822_s4, %s3414_s19  ;;  %s59_s16 = int_to_ptr.vmem [resolvable:$true] %s58_s16 }
  0x38   :  { %p3418_p11 = scmp.lt.u32.totalorder %s3414_s19, %s3822_s4 }
  0x3a   :  { %p3420_p12 = pnand %p3418_p11, %p3415_p10 }
  0x3c   :  { %3423 = shalt.err (!%p3420_p12)
}
  0x3d   :  { %s3424_s23 = scalar_lea.vmem %s59_s16, 10240  ;;  %p3429_p0 = scmp.lt.s32.totalorder %s59_s16, %s59_s16 }
  0x3e   :  { %p3425_p13 = scmp.ne.s32.totalorder %s59_s16, %s3424_s23  ;;  %p3430_p1 = scmp.lt.s32.totalorder %s3424_s23, %s3424_s23 }
  0x40   :  { %p3431_p2 = por %p3430_p1, %p3429_p0 }
  0x42   :  { %p3432_p3 = pnand %p3431_p2, %p3425_p13 }
  0x44   :  { %3435 = shalt.err (!%p3432_p3)
}
  0x45   :  { %64 = dma.hbm_to_vmem [thread:$0]  %s3822_s4, 10240, %s59_s16, [#allocation10], %s3473_s0, %s3473_s0, %s3474_s12  }
  0x46   :  { %3458 = dma.done.wait [#allocation4], 3072  }
  0x47   :  { %3459 = vsyncadd [#allocation4], 4294964224 }
  0x48   :  { %3460 = dma.done.wait [#allocation7], 11264  }
  0x49   :  { %3461 = vsyncadd [#allocation7], 4294956032 }
  0x4a   :  { %3462 = dma.done.wait [#allocation10], 10240  }
  0x4b   :  { %3463 = vsyncadd [#allocation10], 4294957056  ;;  %v87_v0 = vld [vmem:[#allocation8] sm:$0xff]  ;;  %v88_v1 = vld [vmem:[#allocation8 + $0x28] sm:$0xff]  ;;  %vm803_vm0 = vcmask 523264  }
  0x4c   :  { %v89_v2 = vld [vmem:[#allocation8 + $0x50] sm:$0xff]  ;;  %v2921_v3 = vpack.c.bf16 %v88_v1, %v87_v0  ;;  %v90_v4 = vld [vmem:[#allocation8 + $0x78] sm:$0xff]  ;;  %v91_v6 = vld [vmem:[#allocation8 + $0xa0] sm:$0xff] }
  0x4d   :  { %v2925_v5 = vpack.c.bf16 %v90_v4, %v89_v2  ;;  %v92_v7 = vld [vmem:[#allocation8 + $0xc8] sm:$0xff]  ;;  %v217_v9 = vld [vmem:[#allocation8 + $0x30] sm:$0xff]  ;;  %v218_v11 = vld [vmem:[#allocation8 + $0x58] sm:$0xff] }
  0x4e   :  { %2922 = vmatprep.subr.bf16.mxu0 %v2921_v3  ;;  %v216_v8 = vld [vmem:[#allocation8 + $0x8] sm:$0xff]  ;;  %v2929_v12 = vpack.c.bf16 %v92_v7, %v91_v6  ;;  %v93_v13 = vld [vmem:[#allocation8 + $0xf0] sm:$0xff]  ;;  %v219_v14 = vld [vmem:[#allocation8 + $0x80] sm:$0xff] }
  0x4f   :  { %2924 = vmatpush3.bf16.msra.mxu0 %v2921_v3  ;;  %v2953_v10 = vpack.c.bf16 %v217_v9, %v216_v8  ;;  %v94_v15 = vld [vmem:[#allocation8 + $0x118] sm:$0xff]  ;;  %v2957_v16 = vpack.c.bf16 %v219_v14, %v218_v11  ;;  %v220_v17 = vld [vmem:[#allocation8 + $0xa8] sm:$0xff]  ;;  %v221_v18 = vld [vmem:[#allocation8 + $0xd0] sm:$0xff] }
  0x50   :  { %2926 = vmatprep.subr.bf16.mxu0 %v2925_v5  ;;  %v2961_v19 = vpack.c.bf16 %v221_v18, %v220_v17  ;;  %v3563_v20 = vld [vmem:[#allocation6] sm:$0xff]  ;;  %v2933_v21 = vpack.c.bf16 %v94_v15, %v93_v13  ;;  %v222_v22 = vld [vmem:[#allocation8 + $0xf8] sm:$0xff]  ;;  %v96_v25 = vld [vmem:[#allocation8 + $0x168] sm:$0xff] }
  0x51   :  { %2954 = vmatprep.subr.bf16.mxu1 %v2953_v10  ;;  %v223_v23 = vld [vmem:[#allocation8 + $0x120] sm:$0xff]  ;;  %2457 = vmatprep.mubr.f32.mxu0 %v3563_v20  ;;  %v224_v28 = vld [vmem:[#allocation8 + $0x148] sm:$0xff]  ;;  %v225_v29 = vld [vmem:[#allocation8 + $0x170] sm:$0xff] }
  0x52   :  { %2956 = vmatpush3.bf16.msra.mxu1 %v2953_v10  ;;  %v95_v24 = vld [vmem:[#allocation8 + $0x140] sm:$0xff]  ;;  %2501 = vmatprep.mubr.f32.mxu1 %v3563_v20  ;;  %v2965_v26 = vpack.c.bf16 %v223_v23, %v222_v22  ;;  %v97_v30 = vld [vmem:[#allocation8 + $0x190] sm:$0xff]  ;;  %v98_v31 = vld [vmem:[#allocation8 + $0x1b8] sm:$0xff]  ;;  %v2969_v32 = vpack.c.bf16 %v225_v29, %v224_v28 }
  0x53   :  { %2928 = vmatpush3.bf16.msra.mxu0 %v2925_v5  ;;  %2958 = vmatprep.subr.bf16.mxu1 %v2957_v16  ;;  %v2937_v27 = vpack.c.bf16 %v96_v25, %v95_v24  ;;  %v2941_v33 = vpack.c.bf16 %v98_v31, %v97_v30  ;;  %v226_v34 = vld [vmem:[#allocation8 + $0x198] sm:$0xff]  ;;  %v227_v35 = vld [vmem:[#allocation8 + $0x1c0] sm:$0xff]  ;;  %v100_v37 = vld [vmem:[#allocation8 + $0x208] sm:$0xff] }
  0x54   :  { %2930 = vmatprep.subr.bf16.mxu0 %v2929_v12  ;;  %v99_v36 = vld [vmem:[#allocation8 + $0x1e0] sm:$0xff]  ;;  %v2973_v38 = vpack.c.bf16 %v227_v35, %v226_v34  ;;  %v228_v40 = vld [vmem:[#allocation8 + $0x1e8] sm:$0xff]  ;;  %v229_v41 = vld [vmem:[#allocation8 + $0x210] sm:$0xff] }
  0x55   :  { %v2945_v39 = vpack.c.bf16 %v100_v37, %v99_v36  ;;  %v101_v42 = vld [vmem:[#allocation8 + $0x230] sm:$0xff]  ;;  %v102_v43 = vld [vmem:[#allocation8 + $0x258] sm:$0xff]  ;;  %v2977_v44 = vpack.c.bf16 %v229_v41, %v228_v40  ;;  %v231_v47 = vld [vmem:[#allocation8 + $0x260] sm:$0xff] }
  0x56   :  { %2960 = vmatpush3.bf16.msra.mxu1 %v2957_v16  ;;  %v2949_v45 = vpack.c.bf16 %v102_v43, %v101_v42  ;;  %v230_v46 = vld [vmem:[#allocation8 + $0x238] sm:$0xff]  ;;  %v345_v48 = vld [vmem:[#allocation8 + $0x10] sm:$0xff]  ;;  %v475_v53 = vld [vmem:[#allocation8 + $0x40] sm:$0xff] }
  0x57   :  { %2932 = vmatpush3.bf16.msra.mxu0 %v2929_v12  ;;  %2962 = vmatprep.subr.bf16.mxu1 %v2961_v19  ;;  %v346_v49 = vld [vmem:[#allocation8 + $0x38] sm:$0xff]  ;;  %v2981_v50 = vpack.c.bf16 %v231_v47, %v230_v46  ;;  %v347_v54 = vld [vmem:[#allocation8 + $0x60] sm:$0xff]  ;;  %v348_v55 = vld [vmem:[#allocation8 + $0x88] sm:$0xff] }
  0x58   :  { %2934 = vmatprep.subr.bf16.mxu0 %v2933_v21  ;;  %v2985_v51 = vpack.c.bf16 %v346_v49, %v345_v48  ;;  %v474_v52 = vld [vmem:[#allocation8 + $0x18] sm:$0xff]  ;;  %v3567_v56 = vld [vmem:[#allocation6 + $0x8] sm:$0xff]  ;;  %v2989_v58 = vpack.c.bf16 %v348_v55, %v347_v54  ;;  %v477_v60 = vld [vmem:[#allocation8 + $0x90] sm:$0xff] }
  0x59   :  { %v3017_v57 = vpack.c.bf16 %v475_v53, %v474_v52  ;;  %v476_v59 = vld [vmem:[#allocation8 + $0x68] sm:$0xff]  ;;  %v349_v61 = vld [vmem:[#allocation8 + $0xb0] sm:$0xff]  ;;  %v350_v62 = vld [vmem:[#allocation8 + $0xd8] sm:$0xff] }
  0x5a   :  { %2964 = vmatpush3.bf16.msra.mxu1 %v2961_v19  ;;  %v3569_v63 = vld [vmem:[#allocation6 + $0x10] sm:$0xff]  ;;  %v3572_v0 = vld [vmem:[#allocation6 + $0x18] sm:$0xff]  ;;  %v3021_v1 = vpack.c.bf16 %v477_v60, %v476_v59  ;;  %v2993_v2 = vpack.c.bf16 %v350_v62, %v349_v61  ;;  %v479_v4 = vld [vmem:[#allocation8 + $0xe0] sm:$0xff] }
  0x5b   :  { %2936 = vmatpush3.bf16.msra.mxu0 %v2933_v21  ;;  %2966 = vmatprep.subr.bf16.mxu1 %v2965_v26  ;;  %v478_v3 = vld [vmem:[#allocation8 + $0xb8] sm:$0xff]  ;;  %v351_v5 = vld [vmem:[#allocation8 + $0x100] sm:$0xff]  ;;  %v352_v6 = vld [vmem:[#allocation8 + $0x128] sm:$0xff] }
  0x5c   :  { %2938 = vmatprep.subr.bf16.mxu0 %v2937_v27  ;;  %v3576_v7 = vld [vmem:[#allocation6 + $0x20] sm:$0xff]  ;;  %v3579_v8 = vld [vmem:[#allocation6 + $0x28] sm:$0xff]  ;;  %v3025_v9 = vpack.c.bf16 %v479_v4, %v478_v3  ;;  %v2997_v10 = vpack.c.bf16 %v352_v6, %v351_v5  ;;  %v481_v12 = vld [vmem:[#allocation8 + $0x130] sm:$0xff] }
  0x5d   :  { %v480_v11 = vld [vmem:[#allocation8 + $0x108] sm:$0xff]  ;;  %v353_v13 = vld [vmem:[#allocation8 + $0x150] sm:$0xff]  ;;  %v354_v14 = vld [vmem:[#allocation8 + $0x178] sm:$0xff] }
  0x5e   :  { %2968 = vmatpush3.bf16.msra.mxu1 %v2965_v26  ;;  %v3582_v15 = vld [vmem:[#allocation6 + $0x30] sm:$0xff]  ;;  %v3586_v16 = vld [vmem:[#allocation6 + $0x38] sm:$0xff]  ;;  %v3029_v17 = vpack.c.bf16 %v481_v12, %v480_v11  ;;  %v3001_v18 = vpack.c.bf16 %v354_v14, %v353_v13  ;;  %v483_v21 = vld [vmem:[#allocation8 + $0x180] sm:$0xff] }
  0x5f   :  { %2940 = vmatpush3.bf16.msra.mxu0 %v2937_v27  ;;  %2970 = vmatprep.subr.bf16.mxu1 %v2969_v32  ;;  %v482_v19 = vld [vmem:[#allocation8 + $0x158] sm:$0xff]  ;;  %v355_v22 = vld [vmem:[#allocation8 + $0x1a0] sm:$0xff]  ;;  %v356_v23 = vld [vmem:[#allocation8 + $0x1c8] sm:$0xff] }
  0x60   :  { %2942 = vmatprep.subr.bf16.mxu0 %v2941_v33  ;;  %v3033_v24 = vpack.c.bf16 %v483_v21, %v482_v19  ;;  %v3005_v25 = vpack.c.bf16 %v356_v23, %v355_v22  ;;  %v484_v26 = vld [vmem:[#allocation8 + $0x1a8] sm:$0xff]  ;;  %v485_v27 = vld [vmem:[#allocation8 + $0x1d0] sm:$0xff]  ;;  %v358_v29 = vld [vmem:[#allocation8 + $0x218] sm:$0xff] }
  0x61   :  { %v357_v28 = vld [vmem:[#allocation8 + $0x1f0] sm:$0xff]  ;;  %v3037_v30 = vpack.c.bf16 %v485_v27, %v484_v26  ;;  %v359_v34 = vld [vmem:[#allocation8 + $0x240] sm:$0xff]  ;;  %v360_v35 = vld [vmem:[#allocation8 + $0x268] sm:$0xff] }
  0x62   :  { %2972 = vmatpush3.bf16.msra.mxu1 %v2969_v32  ;;  %v3009_v31 = vpack.c.bf16 %v358_v29, %v357_v28  ;;  %v486_v32 = vld [vmem:[#allocation8 + $0x1f8] sm:$0xff]  ;;  %v3013_v37 = vpack.c.bf16 %v360_v35, %v359_v34  ;;  %v603_v40 = vld [vmem:[#allocation8 + $0x20] sm:$0xff]  ;;  %v604_v41 = vld [vmem:[#allocation8 + $0x48] sm:$0xff] }
  0x63   :  { %2944 = vmatpush3.bf16.msra.mxu0 %v2941_v33  ;;  %2974 = vmatprep.subr.bf16.mxu1 %v2973_v38  ;;  %v487_v33 = vld [vmem:[#allocation8 + $0x220] sm:$0xff]  ;;  %v3049_v43 = vpack.c.bf16 %v604_v41, %v603_v40  ;;  %v608_v48 = vld [vmem:[#allocation8 + $0xe8] sm:$0xff]  ;;  %v3622_v4 = vld [vmem:[#allocation3 + $0x10] sm:$0xff] }
  0x64   :  { %2946 = vmatprep.subr.bf16.mxu0 %v2945_v39  ;;  %v3041_v36 = vpack.c.bf16 %v487_v33, %v486_v32  ;;  %v607_v47 = vld [vmem:[#allocation8 + $0xc0] sm:$0xff]  ;;  %v612_v54 = vld [vmem:[#allocation8 + $0x188] sm:$0xff] }
  0x65   :  { %v3057_v49 = vpack.c.bf16 %v608_v48, %v607_v47  ;;  %v611_v53 = vld [vmem:[#allocation8 + $0x160] sm:$0xff]  ;;  %v616_v61 = vld [vmem:[#allocation8 + $0x228] sm:$0xff] }
  0x66   :  { %2976 = vmatpush3.bf16.msra.mxu1 %v2973_v38  ;;  %v488_v38 = vld [vmem:[#allocation8 + $0x248] sm:$0xff]  ;;  %v3065_v55 = vpack.c.bf16 %v612_v54, %v611_v53  ;;  %v615_v60 = vld [vmem:[#allocation8 + $0x200] sm:$0xff] }
  0x67   :  { %2948 = vmatpush3.bf16.msra.mxu0 %v2945_v39  ;;  %2978 = vmatprep.subr.bf16.mxu1 %v2977_v44  ;;  %v489_v39 = vld [vmem:[#allocation8 + $0x270] sm:$0xff]  ;;  %v3073_v62 = vpack.c.bf16 %v616_v61, %v615_v60  ;;  %v3628_v61 = vld [vmem:[#allocation3 + $0x20] sm:$0xff] }
  0x68   :  { %2950 = vmatprep.subr.bf16.mxu0 %v2949_v45  ;;  %v3045_v42 = vpack.c.bf16 %v489_v39, %v488_v38 }
  0x6a   :  { %2980 = vmatpush3.bf16.msra.mxu1 %v2977_v44  ;;  %v605_v44 = vld [vmem:[#allocation8 + $0x70] sm:$0xff] }
  0x6b   :  { %2952 = vmatpush3.bf16.msra.mxu0 %v2949_v45  ;;  %2982 = vmatprep.subr.bf16.mxu1 %v2981_v50  ;;  %v606_v45 = vld [vmem:[#allocation8 + $0x98] sm:$0xff] }
  0x6c   :  { %2986 = vmatprep.subr.bf16.mxu0 %v2985_v51  ;;  %v3053_v46 = vpack.c.bf16 %v606_v45, %v605_v44 }
  0x6e   :  { %2458 = vmatmul.mubr.f32.vlgmr.msra.gmra.mrb[0].mxu0 %v3567_v56  ;;  %2984 = vmatpush3.bf16.msra.mxu1 %v2981_v50  ;;  %v609_v50 = vld [vmem:[#allocation8 + $0x110] sm:$0xff] }
  0x6f   :  { %2988 = vmatpush3.bf16.msra.mxu0 %v2985_v51  ;;  %3018 = vmatprep.subr.bf16.mxu1 %v3017_v57  ;;  %v610_v51 = vld [vmem:[#allocation8 + $0x138] sm:$0xff] }
  0x70   :  { %2990 = vmatprep.subr.bf16.mxu0 %v2989_v58  ;;  %2460 = vmatprep.mubr.f32.mxu0 %v3569_v63  ;;  %v3061_v52 = vpack.c.bf16 %v610_v51, %v609_v50  ;;  %v1046_v51 = vld [vmem:[#allocation9] sm:$0xff] }
  0x71   :  { %2502 = vmatmul.mubr.f32.vlgmr.msra.gmra.mrb[0].mxu1 %v3567_v56 }
  0x72   :  { %3020 = vmatpush3.bf16.msra.mxu1 %v3017_v57  ;;  %2461 = vmatmul.mubr.f32.gmra.mrb[2].mxu0 %v3572_v0  ;;  %v613_v57 = vld [vmem:[#allocation8 + $0x1b0] sm:$0xff] }
  0x73   :  { %2992 = vmatpush3.bf16.msra.mxu0 %v2989_v58  ;;  %3022 = vmatprep.subr.bf16.mxu1 %v3021_v1  ;;  %v614_v58 = vld [vmem:[#allocation8 + $0x1d8] sm:$0xff] }
  0x74   :  { %2994 = vmatprep.subr.bf16.mxu0 %v2993_v2  ;;  %2463 = vmatprep.mubr.f32.mxu0 %v3576_v7  ;;  %v3069_v59 = vpack.c.bf16 %v614_v58, %v613_v57  ;;  %v1049_v57 = vld [vmem:[#allocation9 + $0x78] sm:$0xff] }
  0x75   :  { %2504 = vmatprep.mubr.f32.mxu1 %v3569_v63 }
  0x76   :  { %3024 = vmatpush3.bf16.msra.mxu1 %v3021_v1  ;;  %2464 = vmatmul.mubr.f32.gmra.mrb[4].mxu0 %v3579_v8  ;;  %v617_v1 = vld [vmem:[#allocation8 + $0x250] sm:$0xff] }
  0x77   :  { %2996 = vmatpush3.bf16.msra.mxu0 %v2993_v2  ;;  %3026 = vmatprep.subr.bf16.mxu1 %v3025_v9  ;;  %v618_v2 = vld [vmem:[#allocation8 + $0x278] sm:$0xff] }
  0x78   :  { %2998 = vmatprep.subr.bf16.mxu0 %v2997_v10  ;;  %2466 = vmatprep.mubr.f32.mxu0 %v3582_v15  ;;  %v3077_v3 = vpack.c.bf16 %v618_v2, %v617_v1  ;;  %v1050_v2 = vld [vmem:[#allocation9 + $0xa0] sm:$0xff] }
  0x79   :  { %2505 = vmatmul.mubr.f32.gmra.mrb[2].mxu1 %v3572_v0 }
  0x7a   :  { %3028 = vmatpush3.bf16.msra.mxu1 %v3025_v9  ;;  %2467 = vmatmul.mubr.f32.gmra.mrb[6].mxu0 %v3586_v16 }
  0x7b   :  { %3000 = vmatpush3.bf16.msra.mxu0 %v2997_v10  ;;  %3030 = vmatprep.subr.bf16.mxu1 %v3029_v17 }
  0x7c   :  { %3002 = vmatprep.subr.bf16.mxu0 %v3001_v18  ;;  %2545 = vmatprep.mubr.f32.mxu0 %v3563_v20 }
  0x7d   :  { %2507 = vmatprep.mubr.f32.mxu1 %v3576_v7 }
  0x7e   :  { %3032 = vmatpush3.bf16.msra.mxu1 %v3029_v17 }
  0x7f   :  { %3004 = vmatpush3.bf16.msra.mxu0 %v3001_v18  ;;  %3034 = vmatprep.subr.bf16.mxu1 %v3033_v24 }
  0x80   :  { %3006 = vmatprep.subr.bf16.mxu0 %v3005_v25  ;;  %2508 = vmatmul.mubr.f32.gmra.mrb[4].mxu1 %v3579_v8 }
  0x81   :  { %2510 = vmatprep.mubr.f32.mxu1 %v3582_v15 }
  0x82   :  { %3036 = vmatpush3.bf16.msra.mxu1 %v3033_v24 }
  0x83   :  { %3008 = vmatpush3.bf16.msra.mxu0 %v3005_v25  ;;  %3038 = vmatprep.subr.bf16.mxu1 %v3037_v30 }
  0x84   :  { %3010 = vmatprep.subr.bf16.mxu0 %v3009_v31  ;;  %2511 = vmatmul.mubr.f32.gmra.mrb[6].mxu1 %v3586_v16 }
  0x85   :  { %2589 = vmatprep.mubr.f32.mxu1 %v3563_v20 }
  0x86   :  { %3040 = vmatpush3.bf16.msra.mxu1 %v3037_v30 }
  0x87   :  { %3012 = vmatpush3.bf16.msra.mxu0 %v3009_v31  ;;  %3042 = vmatprep.subr.bf16.mxu1 %v3041_v36 }
  0x88   :  { %3014 = vmatprep.subr.bf16.mxu0 %v3013_v37 }
  0x8a   :  { %3044 = vmatpush3.bf16.msra.mxu1 %v3041_v36 }
  0x8b   :  { %3016 = vmatpush3.bf16.msra.mxu0 %v3013_v37  ;;  %3046 = vmatprep.subr.bf16.mxu1 %v3045_v42 }
  0x8c   :  { %3050 = vmatprep.subr.bf16.mxu0 %v3049_v43 }
  0x8e   :  { %2546 = vmatmul.mubr.f32.vlgmr.msra.gmra.mrb[8].mxu0 %v3567_v56  ;;  %3048 = vmatpush3.bf16.msra.mxu1 %v3045_v42 }
  0x8f   :  { %3052 = vmatpush3.bf16.msra.mxu0 %v3049_v43  ;;  %2548 = vmatprep.mubr.f32.mxu0 %v3569_v63 }
  0x90   :  { %3054 = vmatprep.subr.bf16.mxu0 %v3053_v46 }
  0x91   :  { %2590 = vmatmul.mubr.f32.vlgmr.msra.gmra.mrb[8].mxu1 %v3567_v56 }
  0x92   :  { %2549 = vmatmul.mubr.f32.gmra.mrb[10].mxu0 %v3572_v0  ;;  %2592 = vmatprep.mubr.f32.mxu1 %v3569_v63 }
  0x93   :  { %3056 = vmatpush3.bf16.msra.mxu0 %v3053_v46  ;;  %2551 = vmatprep.mubr.f32.mxu0 %v3576_v7 }
  0x94   :  { %3058 = vmatprep.subr.bf16.mxu0 %v3057_v49 }
  0x95   :  { %2593 = vmatmul.mubr.f32.gmra.mrb[10].mxu1 %v3572_v0 }
  0x96   :  { %2552 = vmatmul.mubr.f32.gmra.mrb[12].mxu0 %v3579_v8  ;;  %2595 = vmatprep.mubr.f32.mxu1 %v3576_v7 }
  0x97   :  { %3060 = vmatpush3.bf16.msra.mxu0 %v3057_v49  ;;  %2554 = vmatprep.mubr.f32.mxu0 %v3582_v15 }
  0x98   :  { %3062 = vmatprep.subr.bf16.mxu0 %v3061_v52 }
  0x99   :  { %2596 = vmatmul.mubr.f32.gmra.mrb[12].mxu1 %v3579_v8 }
  0x9a   :  { %2555 = vmatmul.mubr.f32.gmra.mrb[14].mxu0 %v3586_v16  ;;  %2598 = vmatprep.mubr.f32.mxu1 %v3582_v15 }
  0x9b   :  { %3064 = vmatpush3.bf16.msra.mxu0 %v3061_v52  ;;  %2633 = vmatprep.mubr.f32.mxu0 %v3563_v20  ;;  %v3619_v20 = vld [vmem:[#allocation3 + $0x8] sm:$0xff] }
  0x9c   :  { %3066 = vmatprep.subr.bf16.mxu0 %v3065_v55  ;;  %v1047_v52 = vld [vmem:[#allocation9 + $0x28] sm:$0xff] }
  0x9d   :  { %2599 = vmatmul.mubr.f32.gmra.mrb[14].mxu1 %v3586_v16  ;;  %v3129_v53 = vpack.c.bf16 %v1047_v52, %v1046_v51  ;;  %v3694_v51 = vld [vmem:[#allocation3 + $0xb8] sm:$0xff] }
  0x9e   :  { %892 = vmatprep.mubr.f32.mxu1 %v3619_v20 }
  0x9f   :  { %3068 = vmatpush3.bf16.msra.mxu0 %v3065_v55  ;;  %v1048_v55 = vld [vmem:[#allocation9 + $0x50] sm:$0xff] }
  0xa0   :  { %3070 = vmatprep.subr.bf16.mxu0 %v3069_v59 }
  0xa3   :  { %3072 = vmatpush3.bf16.msra.mxu0 %v3069_v59  ;;  %v3626_v59 = vld [vmem:[#allocation3] sm:$0xff] }
  0xa4   :  { %3074 = vmatprep.subr.bf16.mxu0 %v3073_v62 }
  0xa7   :  { %3076 = vmatpush3.bf16.msra.mxu0 %v3073_v62  ;;  %v3133_v62 = vpack.c.bf16 %v1049_v57, %v1048_v55  ;;  %v1185_v55 = vld [vmem:[#allocation9 + $0x198] sm:$0xff] }
  0xa8   :  { %3078 = vmatprep.subr.bf16.mxu0 %v3077_v3 }
  0xab   :  { %3080 = vmatpush3.bf16.msra.mxu0 %v3077_v3  ;;  %v1051_v3 = vld [vmem:[#allocation9 + $0xc8] sm:$0xff] }
  0xae   :  { %2634 = vmatmul.mubr.f32.vlgmr.msra.gmra.mrb[16].mxu0 %v3567_v56 }
  0xaf   :  { %2636 = vmatprep.mubr.f32.mxu0 %v3569_v63 }
  0xb2   :  { %2637 = vmatmul.mubr.f32.gmra.mrb[18].mxu0 %v3572_v0 }
  0xb3   :  { %2639 = vmatprep.mubr.f32.mxu0 %v3576_v7 }
  0xb6   :  { %2640 = vmatmul.mubr.f32.gmra.mrb[20].mxu0 %v3579_v8 }
  0xb7   :  { %2642 = vmatprep.mubr.f32.mxu0 %v3582_v15 }
  0xba   :  { %2643 = vmatmul.mubr.f32.gmra.mrb[22].mxu0 %v3586_v16 }
  0xbb   :  { %2661 = vmatprep.mubr.msk.f32.mxu0 %vm803_vm0, %v3622_v4 }
 0x141   :  { %v2459_v56 = vpop.f32.mrb[0].mxu0 }
 0x142   :  { %v169_v63 = vpop.f32.mrb[1].mxu0 }
 0x143   :  { %v3083_v0 = vpack.c.bf16 %v2459_v56, %v169_v63  ;;  %v3632_v63 = vld [vmem:[#allocation3 + $0x18] sm:$0xff] }
 0x144   :  { %v2503_v5 = vpop.f32.mrb[0].mxu1 }
 0x145   :  { %v2462_v6 = vpop.f32.mrb[2].mxu0  ;;  %v298_v7 = vpop.f32.mrb[1].mxu1 }
 0x146   :  { %v179_v8 = vpop.f32.mrb[3].mxu0  ;;  %v3099_v9 = vpack.c.bf16 %v2503_v5, %v298_v7  ;;  %v3634_v5 = vld [vmem:[#allocation3 + $0x38] sm:$0xff] }
 0x147   :  { %v3087_v10 = vpack.c.bf16 %v2462_v6, %v179_v8  ;;  %v3137_v6 = vpack.c.bf16 %v1051_v3, %v1050_v2  ;;  %v1052_v8 = vld [vmem:[#allocation9 + $0xf0] sm:$0xff]  ;;  %v1187_v2 = vld [vmem:[#allocation9 + $0x1e8] sm:$0xff] }
 0x149   :  { %v2465_v11 = vpop.f32.mrb[4].mxu0 }
 0x14a   :  { %v189_v12 = vpop.f32.mrb[5].mxu0 }
 0x14b   :  { %v3091_v13 = vpack.c.bf16 %v2465_v11, %v189_v12  ;;  %v3638_v11 = vld [vmem:[#allocation3 + $0x30] sm:$0xff] }
 0x14c   :  { %v2506_v14 = vpop.f32.mrb[2].mxu1 }
 0x14d   :  { %v2468_v15 = vpop.f32.mrb[6].mxu0  ;;  %v308_v16 = vpop.f32.mrb[3].mxu1 }
 0x14e   :  { %v199_v17 = vpop.f32.mrb[7].mxu0  ;;  %v3103_v18 = vpack.c.bf16 %v2506_v14, %v308_v16  ;;  %v1175_v14 = vld [vmem:[#allocation9 + $0x8] sm:$0xff] }
 0x14f   :  { %v3095_v19 = vpack.c.bf16 %v2468_v15, %v199_v17  ;;  %v1176_v15 = vld [vmem:[#allocation9 + $0x30] sm:$0xff] }
 0x153   :  { %v2509_v21 = vpop.f32.mrb[4].mxu1 }
 0x154   :  { %v318_v22 = vpop.f32.mrb[5].mxu1 }
 0x155   :  { %v3107_v23 = vpack.c.bf16 %v2509_v21, %v318_v22  ;;  %v3644_v22 = vld [vmem:[#allocation3 + $0x48] sm:$0xff] }
 0x157   :  { %v2512_v24 = vpop.f32.mrb[6].mxu1 }
 0x158   :  { %v328_v25 = vpop.f32.mrb[7].mxu1 }
 0x159   :  { %v3111_v26 = vpack.c.bf16 %v2512_v24, %v328_v25  ;;  %v3646_v24 = vld [vmem:[#allocation3 + $0x68] sm:$0xff]  ;;  %v3161_v25 = vpack.c.bf16 %v1176_v15, %v1175_v14  ;;  %v1304_v14 = vld [vmem:[#allocation9 + $0x10] sm:$0xff]  ;;  %v1305_v15 = vld [vmem:[#allocation9 + $0x38] sm:$0xff] }
 0x161   :  { %v2547_v27 = vpop.f32.mrb[8].mxu0 }
 0x162   :  { %v427_v28 = vpop.f32.mrb[9].mxu0 }
 0x163   :  { %v3081_v29 = vpack.c.bf16 %v2547_v27, %v427_v28  ;;  %v1177_v27 = vld [vmem:[#allocation9 + $0x58] sm:$0xff]  ;;  %v1178_v28 = vld [vmem:[#allocation9 + $0x80] sm:$0xff] }
 0x164   :  { %v2591_v30 = vpop.f32.mrb[8].mxu1 }
 0x165   :  { %v2550_v31 = vpop.f32.mrb[10].mxu0  ;;  %3082 = vmatprep.subr.bf16.mxu1 %v3081_v29  ;;  %v556_v32 = vpop.f32.mrb[9].mxu1  ;;  %v3650_v29 = vld [vmem:[#allocation3 + $0x60] sm:$0xff] }
 0x166   :  { %v437_v33 = vpop.f32.mrb[11].mxu0  ;;  %3084 = vmatpush3.bf16.msra.mxu1 %v3083_v0  ;;  %v3097_v34 = vpack.c.bf16 %v2591_v30, %v556_v32  ;;  %v3652_v30 = vld [vmem:[#allocation3 + $0x28] sm:$0xff]  ;;  %v3656_v32 = vld [vmem:[#allocation3 + $0x40] sm:$0xff] }
 0x167   :  { %v3085_v35 = vpack.c.bf16 %v2550_v31, %v437_v33  ;;  %v3654_v31 = vld [vmem:[#allocation3 + $0x80] sm:$0xff]  ;;  %v3165_v33 = vpack.c.bf16 %v1178_v28, %v1177_v27 }
 0x168   :  { %v2594_v36 = vpop.f32.mrb[10].mxu1 }
 0x169   :  { %v2553_v37 = vpop.f32.mrb[12].mxu0  ;;  %3086 = vmatprep.subr.bf16.mxu1 %v3085_v35  ;;  %v566_v38 = vpop.f32.mrb[11].mxu1  ;;  %v1180_v35 = vld [vmem:[#allocation9 + $0xd0] sm:$0xff] }
 0x16a   :  { %v447_v39 = vpop.f32.mrb[13].mxu0  ;;  %3088 = vmatpush3.bf16.msra.mxu1 %v3087_v10  ;;  %v3101_v40 = vpack.c.bf16 %v2594_v36, %v566_v38  ;;  %v3662_v36 = vld [vmem:[#allocation3 + $0x78] sm:$0xff] }
 0x16b   :  { %v3089_v41 = vpack.c.bf16 %v2553_v37, %v447_v39  ;;  %v3666_v37 = vld [vmem:[#allocation3 + $0x58] sm:$0xff]  ;;  %v3670_v39 = vld [vmem:[#allocation3 + $0x70] sm:$0xff] }
 0x16c   :  { %v2597_v42 = vpop.f32.mrb[12].mxu1  ;;  %v3668_v38 = vld [vmem:[#allocation3 + $0x98] sm:$0xff] }
 0x16d   :  { %v2556_v43 = vpop.f32.mrb[14].mxu0  ;;  %3090 = vmatprep.subr.bf16.mxu1 %v3089_v41  ;;  %v576_v44 = vpop.f32.mrb[13].mxu1  ;;  %v1181_v41 = vld [vmem:[#allocation9 + $0xf8] sm:$0xff] }
 0x16e   :  { %v457_v45 = vpop.f32.mrb[15].mxu0  ;;  %3092 = vmatpush3.bf16.msra.mxu1 %v3091_v13  ;;  %v3105_v46 = vpack.c.bf16 %v2597_v42, %v576_v44  ;;  %v3640_v13 = vld [vmem:[#allocation3 + $0x50] sm:$0xff]  ;;  %v1182_v42 = vld [vmem:[#allocation9 + $0x120] sm:$0xff]  ;;  %v3680_v44 = vld [vmem:[#allocation3 + $0x88] sm:$0xff] }
 0x16f   :  { %v3093_v47 = vpack.c.bf16 %v2556_v43, %v457_v45  ;;  %v3676_v43 = vld [vmem:[#allocation3 + $0x90] sm:$0xff] }
 0x170   :  { %v2600_v48 = vpop.f32.mrb[14].mxu1  ;;  %v3682_v45 = vld [vmem:[#allocation3 + $0xb0] sm:$0xff] }
 0x171   :  { %3094 = vmatprep.subr.bf16.mxu1 %v3093_v47  ;;  %v586_v49 = vpop.f32.mrb[15].mxu1  ;;  %v3173_v47 = vpack.c.bf16 %v1182_v42, %v1181_v41 }
 0x172   :  { %3096 = vmatpush3.bf16.msra.mxu1 %v3095_v19  ;;  %v3109_v50 = vpack.c.bf16 %v2600_v48, %v586_v49  ;;  %v1055_v19 = vld [vmem:[#allocation9 + $0x168] sm:$0xff]  ;;  %v1184_v49 = vld [vmem:[#allocation9 + $0x170] sm:$0xff] }
 0x173   :  { %3098 = vmatprep.subr.bf16.mxu1 %v3097_v34  ;;  %v1179_v34 = vld [vmem:[#allocation9 + $0xa8] sm:$0xff] }
 0x174   :  { %v1183_v48 = vld [vmem:[#allocation9 + $0x148] sm:$0xff] }
 0x175   :  { %v3177_v52 = vpack.c.bf16 %v1184_v49, %v1183_v48 }
 0x176   :  { %3100 = vmatpush3.bf16.msra.mxu1 %v3099_v9  ;;  %v1053_v9 = vld [vmem:[#allocation9 + $0x118] sm:$0xff] }
 0x177   :  { %3102 = vmatprep.subr.bf16.mxu1 %v3101_v40  ;;  %v3141_v16 = vpack.c.bf16 %v1053_v9, %v1052_v8  ;;  %v3169_v40 = vpack.c.bf16 %v1180_v35, %v1179_v34  ;;  %v1189_v8 = vld [vmem:[#allocation9 + $0x238] sm:$0xff] }
 0x17a   :  { %3104 = vmatpush3.bf16.msra.mxu1 %v3103_v18  ;;  %v1054_v18 = vld [vmem:[#allocation9 + $0x140] sm:$0xff] }
 0x17b   :  { %3106 = vmatprep.subr.bf16.mxu1 %v3105_v46  ;;  %v3684_v46 = vld [vmem:[#allocation3 + $0xa0] sm:$0xff] }
 0x17e   :  { %3108 = vmatpush3.bf16.msra.mxu1 %v3107_v23 }
 0x17f   :  { %3110 = vmatprep.subr.bf16.mxu1 %v3109_v50  ;;  %v3690_v50 = vld [vmem:[#allocation3 + $0xa8] sm:$0xff] }
 0x181   :  { %v2635_v54 = vpop.f32.mrb[16].mxu0 }
 0x182   :  { %v685_v58 = vpop.f32.mrb[17].mxu0  ;;  %3112 = vmatpush3.bf16.msra.mxu1 %v3111_v26  ;;  %v3145_v26 = vpack.c.bf16 %v1055_v19, %v1054_v18  ;;  %v1434_v18 = vld [vmem:[#allocation9 + $0x40] sm:$0xff] }
 0x183   :  { %v3113_v60 = vpack.c.bf16 %v2635_v54, %v685_v58  ;;  %3130 = vmatprep.subr.bf16.mxu1 %v3129_v53  ;;  %v1057_v54 = vld [vmem:[#allocation9 + $0x1b8] sm:$0xff]  ;;  %v1186_v58 = vld [vmem:[#allocation9 + $0x1c0] sm:$0xff] }
 0x185   :  { %v2638_v1 = vpop.f32.mrb[18].mxu0  ;;  %893 = vmatmul.mubr.f32.vlgmr.msra.gmra.mrb[16].mxu1 %v3626_v59  ;;  %3114 = vmatprep.subr.bf16.mxu0 %v3113_v60 }
 0x186   :  { %v695_v56 = vpop.f32.mrb[19].mxu0  ;;  %3116 = vmatpush3.bf16.msra.mxu0 %v3113_v60  ;;  %897 = vmatprep.mubr.f32.mxu1 %v3628_v61  ;;  %v3181_v60 = vpack.c.bf16 %v1186_v58, %v1185_v55 }
 0x187   :  { %v3117_v0 = vpack.c.bf16 %v2638_v1, %v695_v56  ;;  %3132 = vmatpush3.bf16.msra.mxu1 %v3129_v53  ;;  %v1056_v53 = vld [vmem:[#allocation9 + $0x190] sm:$0xff]  ;;  %v1059_v1 = vld [vmem:[#allocation9 + $0x208] sm:$0xff] }
 0x188   :  { %3134 = vmatprep.subr.bf16.mxu1 %v3133_v62  ;;  %v3149_v57 = vpack.c.bf16 %v1057_v54, %v1056_v53  ;;  %v1188_v56 = vld [vmem:[#allocation9 + $0x210] sm:$0xff] }
 0x189   :  { %v2641_v7 = vpop.f32.mrb[20].mxu0  ;;  %898 = vmatmul.mubr.f32.gmra.mrb[18].mxu1 %v3632_v63  ;;  %3118 = vmatprep.subr.bf16.mxu0 %v3117_v0 }
 0x18a   :  { %v705_v10 = vpop.f32.mrb[21].mxu0  ;;  %3120 = vmatpush3.bf16.msra.mxu0 %v3117_v0  ;;  %902 = vmatprep.mubr.f32.mxu1 %v3634_v5  ;;  %v3185_v0 = vpack.c.bf16 %v1188_v56, %v1187_v2  ;;  %v1435_v56 = vld [vmem:[#allocation9 + $0x68] sm:$0xff] }
 0x18b   :  { %v3121_v12 = vpack.c.bf16 %v2641_v7, %v705_v10  ;;  %3136 = vmatpush3.bf16.msra.mxu1 %v3133_v62  ;;  %v1058_v62 = vld [vmem:[#allocation9 + $0x1e0] sm:$0xff]  ;;  %v1061_v7 = vld [vmem:[#allocation9 + $0x258] sm:$0xff] }
 0x18c   :  { %3138 = vmatprep.subr.bf16.mxu1 %v3137_v6  ;;  %v3153_v3 = vpack.c.bf16 %v1059_v1, %v1058_v62  ;;  %v1190_v10 = vld [vmem:[#allocation9 + $0x260] sm:$0xff] }
 0x18d   :  { %v2644_v17 = vpop.f32.mrb[22].mxu0  ;;  %903 = vmatmul.mubr.f32.gmra.mrb[20].mxu1 %v3638_v11  ;;  %3122 = vmatprep.subr.bf16.mxu0 %v3121_v12 }
 0x18e   :  { %v715_v21 = vpop.f32.mrb[23].mxu0  ;;  %3124 = vmatpush3.bf16.msra.mxu0 %v3121_v12  ;;  %907 = vmatprep.mubr.f32.mxu1 %v3640_v13  ;;  %v3189_v12 = vpack.c.bf16 %v1190_v10, %v1189_v8 }
 0x18f   :  { %v3125_v23 = vpack.c.bf16 %v2644_v17, %v715_v21  ;;  %3140 = vmatpush3.bf16.msra.mxu1 %v3137_v6  ;;  %v1060_v6 = vld [vmem:[#allocation9 + $0x230] sm:$0xff]  ;;  %v3193_v17 = vpack.c.bf16 %v1305_v15, %v1304_v14 }
 0x190   :  { %3142 = vmatprep.subr.bf16.mxu1 %v3141_v16  ;;  %v3157_v9 = vpack.c.bf16 %v1061_v7, %v1060_v6 }
 0x191   :  { %908 = vmatmul.mubr.f32.gmra.mrb[22].mxu1 %v3644_v22  ;;  %3126 = vmatprep.subr.bf16.mxu0 %v3125_v23 }
 0x192   :  { %3128 = vmatpush3.bf16.msra.mxu0 %v3125_v23  ;;  %912 = vmatprep.mubr.f32.mxu1 %v3646_v24 }
 0x193   :  { %3162 = vmatprep.subr.bf16.mxu0 %v3161_v25  ;;  %3144 = vmatpush3.bf16.msra.mxu1 %v3141_v16  ;;  %v1433_v16 = vld [vmem:[#allocation9 + $0x18] sm:$0xff] }
 0x194   :  { %3146 = vmatprep.subr.bf16.mxu1 %v3145_v26  ;;  %v3225_v19 = vpack.c.bf16 %v1434_v18, %v1433_v16  ;;  %v1308_v18 = vld [vmem:[#allocation9 + $0xb0] sm:$0xff] }
 0x195   :  { %913 = vmatmul.mubr.f32.gmra.mrb[24].mxu1 %v3650_v29  ;;  %2662 = vmatmul.mubr.msk.f32.vlgmr.msra.gmra.mrb[24].mxu0 %vm803_vm0, %v3652_v30 }
 0x196   :  { %917 = vmatprep.mubr.f32.mxu1 %v3654_v31  ;;  %2664 = vmatprep.mubr.msk.f32.mxu0 %vm803_vm0, %v3656_v32 }
 0x197   :  { %3164 = vmatpush3.bf16.msra.mxu0 %v3161_v25  ;;  %3148 = vmatpush3.bf16.msra.mxu1 %v3145_v26 }
 0x198   :  { %3166 = vmatprep.subr.bf16.mxu0 %v3165_v33  ;;  %3150 = vmatprep.subr.bf16.mxu1 %v3149_v57 }
 0x199   :  { %918 = vmatmul.mubr.f32.gmra.mrb[26].mxu1 %v3662_v36  ;;  %2665 = vmatmul.mubr.msk.f32.gmra.mrb[26].mxu0 %vm803_vm0, %v3666_v37 }
 0x19a   :  { %922 = vmatprep.mubr.f32.mxu1 %v3668_v38  ;;  %2667 = vmatprep.mubr.msk.f32.mxu0 %vm803_vm0, %v3670_v39 }
 0x19b   :  { %3168 = vmatpush3.bf16.msra.mxu0 %v3165_v33  ;;  %3152 = vmatpush3.bf16.msra.mxu1 %v3149_v57 }
 0x19c   :  { %3170 = vmatprep.subr.bf16.mxu0 %v3169_v40  ;;  %3154 = vmatprep.subr.bf16.mxu1 %v3153_v3 }
 0x19d   :  { %923 = vmatmul.mubr.f32.gmra.mrb[28].mxu1 %v3676_v43  ;;  %2668 = vmatmul.mubr.msk.f32.gmra.mrb[28].mxu0 %vm803_vm0, %v3680_v44 }
 0x19e   :  { %927 = vmatprep.mubr.f32.mxu1 %v3682_v45  ;;  %2670 = vmatprep.mubr.msk.f32.mxu0 %vm803_vm0, %v3684_v46 }
 0x19f   :  { %3172 = vmatpush3.bf16.msra.mxu0 %v3169_v40  ;;  %3156 = vmatpush3.bf16.msra.mxu1 %v3153_v3  ;;  %v3702_v40 = vld [vmem:[%s3821_s3] ss:$0 sm:$0xff]  ;;  %v1307_v3 = vld [vmem:[#allocation9 + $0x88] sm:$0xff] }
 0x1a0   :  { %3174 = vmatprep.subr.bf16.mxu0 %v3173_v47  ;;  %3158 = vmatprep.subr.bf16.mxu1 %v3157_v9 }
 0x1a1   :  { %928 = vmatmul.mubr.f32.gmra.mrb[30].mxu1 %v3690_v50  ;;  %2671 = vmatmul.mubr.msk.f32.gmra.mrb[30].mxu0 %vm803_vm0, %v3694_v51 }
 0x1a3   :  { %3176 = vmatpush3.bf16.msra.mxu0 %v3173_v47  ;;  %3160 = vmatpush3.bf16.msra.mxu1 %v3157_v9 }
 0x1a4   :  { %3178 = vmatprep.subr.bf16.mxu0 %v3177_v52  ;;  %3194 = vmatprep.subr.bf16.mxu1 %v3193_v17 }
 0x1a7   :  { %3180 = vmatpush3.bf16.msra.mxu0 %v3177_v52 }
 0x1a8   :  { %3182 = vmatprep.subr.bf16.mxu0 %v3181_v60 }
 0x1ab   :  { %3184 = vmatpush3.bf16.msra.mxu0 %v3181_v60  ;;  %v1306_v60 = vld [vmem:[#allocation9 + $0x60] sm:$0xff] }
 0x1ac   :  { %3186 = vmatprep.subr.bf16.mxu0 %v3185_v0  ;;  %v3197_v15 = vpack.c.bf16 %v1307_v3, %v1306_v60 }
 0x1af   :  { %3188 = vmatpush3.bf16.msra.mxu0 %v3185_v0  ;;  %v1436_v0 = vld [vmem:[#allocation9 + $0x90] sm:$0xff] }
 0x1b0   :  { %3190 = vmatprep.subr.bf16.mxu0 %v3189_v12  ;;  %v3229_v16 = vpack.c.bf16 %v1436_v0, %v1435_v56 }
 0x1b3   :  { %3192 = vmatpush3.bf16.msra.mxu0 %v3189_v12 }
 0x1b4   :  { %3226 = vmatprep.subr.bf16.mxu0 %v3225_v19 }
 0x258   :  { %v2193_v21 = vpop.f32.mrb[16].mxu1 }
 0x259   :  { %v2194_v23 = vpop.f32.mrb[17].mxu1 }
 0x25a   :  { %v2195_v25 = vadd.f32 %v2194_v23, %v2193_v21 }
 0x25c   :  { %v2196_v26 = vpop.f32.mrb[18].mxu1  ;;  %v895_v52 = vadd.f32 %v2195_v25, %v3702_v40 }
 0x25d   :  { %v2197_v27 = vpop.f32.mrb[19].mxu1 }
 0x25e   :  { %v2198_v28 = vadd.f32 %v2197_v27, %v2196_v26  ;;  %v1309_v26 = vld [vmem:[#allocation9 + $0xd8] sm:$0xff] }
 0x25f   :  { %v1437_v27 = vld [vmem:[#allocation9 + $0xb8] sm:$0xff] }
 0x260   :  { %v2199_v33 = vpop.f32.mrb[20].mxu1  ;;  %v900_v42 = vadd.f32 %v2198_v28, %v3702_v40  ;;  %v1438_v28 = vld [vmem:[#allocation9 + $0xe0] sm:$0xff] }
 0x261   :  { %v2200_v34 = vpop.f32.mrb[21].mxu1 }
 0x262   :  { %v2201_v35 = vadd.f32 %v2200_v34, %v2199_v33 }
 0x264   :  { %v2202_v41 = vpop.f32.mrb[22].mxu1  ;;  %v905_v2 = vadd.f32 %v2201_v35, %v3702_v40 }
 0x265   :  { %v2203_v47 = vpop.f32.mrb[23].mxu1 }
 0x266   :  { %v2204_v48 = vadd.f32 %v2203_v47, %v2202_v41 }
 0x268   :  { %v2663_v49 = vpop.f32.mrb[24].mxu0  ;;  %v2205_v53 = vpop.f32.mrb[24].mxu1  ;;  %v910_v58 = vadd.f32 %v2204_v48, %v3702_v40 }
 0x269   :  { %v1005_v54 = vadd.f32 %v2663_v49, %v900_v42  ;;  %v999_v55 = vpop.f32.mrb[25].mxu0  ;;  %v2206_v57 = vpop.f32.mrb[25].mxu1  ;;  %v3201_v49 = vpack.c.bf16 %v1309_v26, %v1308_v18  ;;  %v1442_v18 = vld [vmem:[#allocation9 + $0x180] sm:$0xff] }
 0x26a   :  { %v1000_v62 = vadd.f32 %v999_v55, %v895_v52  ;;  %v2207_v1 = vadd.f32 %v2206_v57, %v2205_v53  ;;  %v3233_v52 = vpack.c.bf16 %v1438_v28, %v1437_v27  ;;  %v1310_v53 = vld [vmem:[#allocation9 + $0x100] sm:$0xff] }
 0x26b   :  { %v3710_v9 = vmax.f32 %v1005_v54, 0.0  ;;  %v1314_v27 = vld [vmem:[#allocation9 + $0x1a0] sm:$0xff] }
 0x26c   :  { %v3708_v6 = vmax.f32 %v1000_v62, 0.0  ;;  %v2666_v7 = vpop.f32.mrb[26].mxu0  ;;  %v2208_v8 = vpop.f32.mrb[26].mxu1  ;;  %v915_v25 = vadd.f32 %v2207_v1, %v3702_v40 }
 0x26d   :  { %v1015_v10 = vadd.f32 %v2666_v7, %v910_v58  ;;  %v1009_v12 = vpop.f32.mrb[27].mxu0  ;;  %v2209_v14 = vpop.f32.mrb[27].mxu1  ;;  %v1440_v58 = vld [vmem:[#allocation9 + $0x130] sm:$0xff] }
 0x26e   :  { %2705 = vmatprep.mubr.f32.mxu1 %v3708_v6  ;;  %2749 = vmatprep.mubr.f32.mxu0 %v3708_v6  ;;  %v1010_v21 = vadd.f32 %v1009_v12, %v905_v2  ;;  %v2210_v23 = vadd.f32 %v2209_v14, %v2208_v8 }
 0x26f   :  { %v3715_v33 = vmax.f32 %v1015_v10, 0.0  ;;  %2706 = vmatmul.mubr.f32.vlgmr.msra.gmra.mrb[32].mxu1 %v3710_v9  ;;  %2750 = vmatmul.mubr.f32.vlgmr.msra.gmra.mrb[32].mxu0 %v3710_v9  ;;  %v1312_v10 = vld [vmem:[#allocation9 + $0x150] sm:$0xff] }
 0x270   :  { %3196 = vmatpush3.bf16.msra.mxu1 %v3193_v17  ;;  %3228 = vmatpush3.bf16.msra.mxu0 %v3225_v19  ;;  %v3719_v34 = vmax.f32 %v1010_v21, 0.0  ;;  %v2211_v35 = vpop.f32.mrb[28].mxu1  ;;  %v920_v41 = vadd.f32 %v2210_v23, %v3702_v40  ;;  %v2669_v42 = vpop.f32.mrb[28].mxu0  ;;  %v1311_v17 = vld [vmem:[#allocation9 + $0x128] sm:$0xff] }
 0x271   :  { %3198 = vmatprep.subr.bf16.mxu1 %v3197_v15  ;;  %3230 = vmatprep.subr.bf16.mxu0 %v3229_v16  ;;  %v2212_v47 = vpop.f32.mrb[29].mxu1  ;;  %v1019_v48 = vpop.f32.mrb[29].mxu0  ;;  %v1439_v19 = vld [vmem:[#allocation9 + $0x108] sm:$0xff]  ;;  %v3205_v7 = vpack.c.bf16 %v1311_v17, %v1310_v53  ;;  %v1445_v53 = vld [vmem:[#allocation9 + $0x1f8] sm:$0xff]  ;;  %v1318_v17 = vld [vmem:[#allocation9 + $0x240] sm:$0xff] }
 0x272   :  { %v2213_v54 = vadd.f32 %v2212_v47, %v2211_v35  ;;  %v1025_v55 = vadd.f32 %v2669_v42, %v920_v41  ;;  %v1020_v57 = vadd.f32 %v1019_v48, %v915_v25  ;;  %2708 = vmatprep.mubr.f32.mxu1 %v3719_v34  ;;  %2752 = vmatprep.mubr.f32.mxu0 %v3719_v34  ;;  %v1315_v35 = vld [vmem:[#allocation9 + $0x1c8] sm:$0xff]  ;;  %v1444_v42 = vld [vmem:[#allocation9 + $0x1d0] sm:$0xff] }
 0x273   :  { %2709 = vmatmul.mubr.f32.gmra.mrb[34].mxu1 %v3715_v33  ;;  %2753 = vmatmul.mubr.f32.gmra.mrb[34].mxu0 %v3715_v33  ;;  %v3237_v8 = vpack.c.bf16 %v1440_v58, %v1439_v19  ;;  %v1443_v41 = vld [vmem:[#allocation9 + $0x1a8] sm:$0xff] }
 0x274   :  { %v3726_v60 = vmax.f32 %v1025_v55, 0.0  ;;  %3200 = vmatpush3.bf16.msra.mxu1 %v3197_v15  ;;  %3232 = vmatpush3.bf16.msra.mxu0 %v3229_v16  ;;  %v2214_v62 = vpop.f32.mrb[30].mxu1  ;;  %v3728_v1 = vmax.f32 %v1020_v57, 0.0  ;;  %v2672_v2 = vpop.f32.mrb[30].mxu0  ;;  %v925_v3 = vadd.f32 %v2213_v54, %v3702_v40  ;;  %v1313_v15 = vld [vmem:[#allocation9 + $0x178] sm:$0xff]  ;;  %v3245_v48 = vpack.c.bf16 %v1444_v42, %v1443_v41  ;;  %v1446_v54 = vld [vmem:[#allocation9 + $0x220] sm:$0xff] }
 0x275   :  { %v2215_v56 = vpop.f32.mrb[31].mxu1  ;;  %3202 = vmatprep.subr.bf16.mxu1 %v3201_v49  ;;  %3234 = vmatprep.subr.bf16.mxu0 %v3233_v52  ;;  %v1029_v0 = vpop.f32.mrb[31].mxu0  ;;  %v1441_v16 = vld [vmem:[#allocation9 + $0x158] sm:$0xff]  ;;  %v3209_v25 = vpack.c.bf16 %v1313_v15, %v1312_v10  ;;  %v3249_v57 = vpack.c.bf16 %v1446_v54, %v1445_v53  ;;  %v1319_v19 = vld [vmem:[#allocation9 + $0x268] sm:$0xff] }
 0x276   :  { %v2216_v12 = vadd.f32 %v2215_v56, %v2214_v62  ;;  %v1030_v14 = vadd.f32 %v1029_v0, %v925_v3  ;;  %2711 = vmatprep.mubr.f32.mxu1 %v3728_v1  ;;  %2755 = vmatprep.mubr.f32.mxu0 %v3728_v1  ;;  %v3241_v26 = vpack.c.bf16 %v1442_v18, %v1441_v16  ;;  %v1447_v58 = vld [vmem:[#allocation9 + $0x248] sm:$0xff]  ;;  %v1448_v62 = vld [vmem:[#allocation9 + $0x270] sm:$0xff]  ;;  %v1562_v56 = vld [vmem:[#allocation9 + $0x20] sm:$0xff] }
 0x277   :  { %2712 = vmatmul.mubr.f32.gmra.mrb[36].mxu1 %v3726_v60  ;;  %2756 = vmatmul.mubr.f32.gmra.mrb[36].mxu0 %v3726_v60  ;;  %v3253_v3 = vpack.c.bf16 %v1448_v62, %v1447_v58  ;;  %v1563_v0 = vld [vmem:[#allocation9 + $0x48] sm:$0xff]  ;;  %v1565_v10 = vld [vmem:[#allocation9 + $0x98] sm:$0xff]  ;;  %v1568_v18 = vld [vmem:[#allocation9 + $0x110] sm:$0xff] }
 0x278   :  { %v930_v21 = vadd.f32 %v2216_v12, %v3702_v40  ;;  %3204 = vmatpush3.bf16.msra.mxu1 %v3201_v49  ;;  %3236 = vmatpush3.bf16.msra.mxu0 %v3233_v52  ;;  %v3736_v23 = vmax.f32 %v1030_v14, 0.0  ;;  %v3213_v40 = vpack.c.bf16 %v1315_v35, %v1314_v27  ;;  %v1316_v49 = vld [vmem:[#allocation9 + $0x1f0] sm:$0xff]  ;;  %v1317_v52 = vld [vmem:[#allocation9 + $0x218] sm:$0xff]  ;;  %v1566_v14 = vld [vmem:[#allocation9 + $0xc0] sm:$0xff] }
 0x279   :  { %3206 = vmatprep.subr.bf16.mxu1 %v3205_v7  ;;  %3238 = vmatprep.subr.bf16.mxu0 %v3237_v8  ;;  %v3217_v55 = vpack.c.bf16 %v1317_v52, %v1316_v49  ;;  %v1567_v15 = vld [vmem:[#allocation9 + $0xe8] sm:$0xff]  ;;  %v1572_v35 = vld [vmem:[#allocation9 + $0x1b0] sm:$0xff]  ;;  %v1573_v41 = vld [vmem:[#allocation9 + $0x1d8] sm:$0xff] }
 0x27a   :  { %v1035_v28 = vadd.f32 %v2672_v2, %v930_v21  ;;  %2714 = vmatprep.mubr.f32.mxu1 %v3736_v23  ;;  %2758 = vmatprep.mubr.f32.mxu0 %v3736_v23  ;;  %v3221_v2 = vpack.c.bf16 %v1319_v19, %v1318_v17  ;;  %v3265_v16 = vpack.c.bf16 %v1567_v15, %v1566_v14  ;;  %v1569_v21 = vld [vmem:[#allocation9 + $0x138] sm:$0xff]  ;;  %v1571_v27 = vld [vmem:[#allocation9 + $0x188] sm:$0xff]  ;;  %v1576_v52 = vld [vmem:[#allocation9 + $0x250] sm:$0xff] }
 0x27b   :  { %v3277_v42 = vpack.c.bf16 %v1573_v41, %v1572_v35  ;;  %v1577_v53 = vld [vmem:[#allocation9 + $0x278] sm:$0xff] }
 0x27c   :  { %v3740_v47 = vmax.f32 %v1035_v28, 0.0  ;;  %3208 = vmatpush3.bf16.msra.mxu1 %v3205_v7  ;;  %3240 = vmatpush3.bf16.msra.mxu0 %v3237_v8  ;;  %v3257_v7 = vpack.c.bf16 %v1563_v0, %v1562_v56  ;;  %v1564_v8 = vld [vmem:[#allocation9 + $0x70] sm:$0xff]  ;;  %v3285_v54 = vpack.c.bf16 %v1577_v53, %v1576_v52 }
 0x27d   :  { %3210 = vmatprep.subr.bf16.mxu1 %v3209_v25  ;;  %3242 = vmatprep.subr.bf16.mxu0 %v3241_v26  ;;  %v3261_v12 = vpack.c.bf16 %v1565_v10, %v1564_v8 }
 0x27e   :  { %2715 = vmatmul.mubr.f32.gmra.mrb[38].mxu1 %v3740_v47  ;;  %2759 = vmatmul.mubr.f32.gmra.mrb[38].mxu0 %v3740_v47 }
 0x27f   :  { %2793 = vmatprep.mubr.f32.mxu1 %v3708_v6  ;;  %2837 = vmatprep.mubr.f32.mxu0 %v3708_v6 }
 0x280   :  { %3212 = vmatpush3.bf16.msra.mxu1 %v3209_v25  ;;  %3244 = vmatpush3.bf16.msra.mxu0 %v3241_v26  ;;  %v3269_v25 = vpack.c.bf16 %v1569_v21, %v1568_v18  ;;  %v1570_v26 = vld [vmem:[#allocation9 + $0x160] sm:$0xff] }
 0x281   :  { %3214 = vmatprep.subr.bf16.mxu1 %v3213_v40  ;;  %3246 = vmatprep.subr.bf16.mxu0 %v3245_v48  ;;  %v3273_v28 = vpack.c.bf16 %v1571_v27, %v1570_v26 }
 0x284   :  { %3216 = vmatpush3.bf16.msra.mxu1 %v3213_v40  ;;  %3248 = vmatpush3.bf16.msra.mxu0 %v3245_v48  ;;  %v1574_v40 = vld [vmem:[#allocation9 + $0x200] sm:$0xff]  ;;  %v1575_v48 = vld [vmem:[#allocation9 + $0x228] sm:$0xff] }
 0x285   :  { %3218 = vmatprep.subr.bf16.mxu1 %v3217_v55  ;;  %3250 = vmatprep.subr.bf16.mxu0 %v3249_v57  ;;  %v3281_v49 = vpack.c.bf16 %v1575_v48, %v1574_v40 }
 0x288   :  { %3220 = vmatpush3.bf16.msra.mxu1 %v3217_v55  ;;  %3252 = vmatpush3.bf16.msra.mxu0 %v3249_v57 }
 0x289   :  { %3222 = vmatprep.subr.bf16.mxu1 %v3221_v2  ;;  %3254 = vmatprep.subr.bf16.mxu0 %v3253_v3 }
 0x28c   :  { %3224 = vmatpush3.bf16.msra.mxu1 %v3221_v2  ;;  %3256 = vmatpush3.bf16.msra.mxu0 %v3253_v3 }
 0x28d   :  { %3258 = vmatprep.subr.bf16.mxu1 %v3257_v7 }
 0x28f   :  { %2794 = vmatmul.mubr.f32.vlgmr.msra.gmra.mrb[40].mxu1 %v3710_v9  ;;  %2838 = vmatmul.mubr.f32.vlgmr.msra.gmra.mrb[40].mxu0 %v3710_v9 }
 0x290   :  { %2796 = vmatprep.mubr.f32.mxu1 %v3719_v34  ;;  %2840 = vmatprep.mubr.f32.mxu0 %v3719_v34 }
 0x291   :  { %3260 = vmatpush3.bf16.msra.mxu1 %v3257_v7 }
 0x292   :  { %3262 = vmatprep.subr.bf16.mxu1 %v3261_v12 }
 0x293   :  { %2797 = vmatmul.mubr.f32.gmra.mrb[42].mxu1 %v3715_v33  ;;  %2841 = vmatmul.mubr.f32.gmra.mrb[42].mxu0 %v3715_v33 }
 0x294   :  { %2799 = vmatprep.mubr.f32.mxu1 %v3728_v1  ;;  %2843 = vmatprep.mubr.f32.mxu0 %v3728_v1 }
 0x295   :  { %3264 = vmatpush3.bf16.msra.mxu1 %v3261_v12 }
 0x296   :  { %3266 = vmatprep.subr.bf16.mxu1 %v3265_v16 }
 0x297   :  { %2800 = vmatmul.mubr.f32.gmra.mrb[44].mxu1 %v3726_v60  ;;  %2844 = vmatmul.mubr.f32.gmra.mrb[44].mxu0 %v3726_v60 }
 0x298   :  { %2802 = vmatprep.mubr.f32.mxu1 %v3736_v23  ;;  %2846 = vmatprep.mubr.f32.mxu0 %v3736_v23 }
 0x299   :  { %3268 = vmatpush3.bf16.msra.mxu1 %v3265_v16 }
 0x29a   :  { %3270 = vmatprep.subr.bf16.mxu1 %v3269_v25 }
 0x29b   :  { %2803 = vmatmul.mubr.f32.gmra.mrb[46].mxu1 %v3740_v47  ;;  %2847 = vmatmul.mubr.f32.gmra.mrb[46].mxu0 %v3740_v47 }
 0x29c   :  { %2881 = vmatprep.mubr.f32.mxu1 %v3708_v6  ;;  %1850 = vmatprep.mubr.f32.mxu0 %v3619_v20 }
 0x29d   :  { %3272 = vmatpush3.bf16.msra.mxu1 %v3269_v25 }
 0x29e   :  { %3274 = vmatprep.subr.bf16.mxu1 %v3273_v28 }
 0x2a1   :  { %3276 = vmatpush3.bf16.msra.mxu1 %v3273_v28 }
 0x2a2   :  { %3278 = vmatprep.subr.bf16.mxu1 %v3277_v42 }
 0x2a5   :  { %3280 = vmatpush3.bf16.msra.mxu1 %v3277_v42 }
 0x2a6   :  { %3282 = vmatprep.subr.bf16.mxu1 %v3281_v49 }
 0x2a9   :  { %3284 = vmatpush3.bf16.msra.mxu1 %v3281_v49 }
 0x2aa   :  { %3286 = vmatprep.subr.bf16.mxu1 %v3285_v54 }
 0x2ad   :  { %3288 = vmatpush3.bf16.msra.mxu1 %v3285_v54 }
 0x2b0   :  { %2882 = vmatmul.mubr.f32.vlgmr.msra.gmra.mrb[48].mxu1 %v3710_v9 }
 0x2b1   :  { %2884 = vmatprep.mubr.f32.mxu1 %v3719_v34 }
 0x2b4   :  { %2885 = vmatmul.mubr.f32.gmra.mrb[50].mxu1 %v3715_v33 }
 0x2b5   :  { %2887 = vmatprep.mubr.f32.mxu1 %v3728_v1 }
 0x2b8   :  { %2888 = vmatmul.mubr.f32.gmra.mrb[52].mxu1 %v3726_v60 }
 0x2b9   :  { %2890 = vmatprep.mubr.f32.mxu1 %v3736_v23 }
 0x2bc   :  { %2891 = vmatmul.mubr.f32.gmra.mrb[54].mxu1 %v3740_v47 }
 0x2bd   :  { %2909 = vmatprep.mubr.msk.f32.mxu1 %vm803_vm0, %v3622_v4 }
 0x342   :  { %v2707_v20 = vpop.f32.mrb[32].mxu1  ;;  %v2751_v6 = vpop.f32.mrb[32].mxu0 }
 0x343   :  { %v1128_v55 = vpop.f32.mrb[33].mxu1  ;;  %v1257_v57 = vpop.f32.mrb[33].mxu0 }
 0x344   :  { %v3291_v9 = vpack.c.bf16 %v2707_v20, %v1128_v55  ;;  %v3307_v17 = vpack.c.bf16 %v2751_v6, %v1257_v57 }
 0x346   :  { %v2710_v34 = vpop.f32.mrb[34].mxu1  ;;  %v2754_v19 = vpop.f32.mrb[34].mxu0 }
 0x347   :  { %v1138_v33 = vpop.f32.mrb[35].mxu1  ;;  %v1267_v58 = vpop.f32.mrb[35].mxu0 }
 0x348   :  { %v3295_v1 = vpack.c.bf16 %v2710_v34, %v1138_v33  ;;  %v3311_v62 = vpack.c.bf16 %v2754_v19, %v1267_v58 }
 0x34a   :  { %v2713_v60 = vpop.f32.mrb[36].mxu1  ;;  %v2757_v2 = vpop.f32.mrb[36].mxu0 }
 0x34b   :  { %v1148_v23 = vpop.f32.mrb[37].mxu1  ;;  %v1277_v3 = vpop.f32.mrb[37].mxu0 }
 0x34c   :  { %v3299_v47 = vpack.c.bf16 %v2713_v60, %v1148_v23  ;;  %v3315_v56 = vpack.c.bf16 %v2757_v2, %v1277_v3 }
 0x351   :  { %v2716_v0 = vpop.f32.mrb[38].mxu1  ;;  %v2760_v4 = vpop.f32.mrb[38].mxu0 }
 0x352   :  { %v1158_v7 = vpop.f32.mrb[39].mxu1  ;;  %v1287_v8 = vpop.f32.mrb[39].mxu0 }
 0x353   :  { %v3303_v10 = vpack.c.bf16 %v2716_v0, %v1158_v7  ;;  %v3319_v12 = vpack.c.bf16 %v2760_v4, %v1287_v8 }
 0x362   :  { %v2795_v14 = vpop.f32.mrb[40].mxu1  ;;  %v2839_v15 = vpop.f32.mrb[40].mxu0 }
 0x363   :  { %v1386_v16 = vpop.f32.mrb[41].mxu1  ;;  %v1515_v18 = vpop.f32.mrb[41].mxu0 }
 0x364   :  { %v3289_v21 = vpack.c.bf16 %v2795_v14, %v1386_v16  ;;  %v3305_v25 = vpack.c.bf16 %v2839_v15, %v1515_v18 }
 0x366   :  { %v2798_v26 = vpop.f32.mrb[42].mxu1  ;;  %v2842_v27 = vpop.f32.mrb[42].mxu0  ;;  %3290 = vmatprep.subr.bf16.mxu0 %v3289_v21 }
 0x367   :  { %v1396_v28 = vpop.f32.mrb[43].mxu1  ;;  %v1525_v35 = vpop.f32.mrb[43].mxu0  ;;  %3292 = vmatpush3.bf16.msra.mxu0 %v3291_v9 }
 0x368   :  { %v3293_v41 = vpack.c.bf16 %v2798_v26, %v1396_v28  ;;  %v3309_v42 = vpack.c.bf16 %v2842_v27, %v1525_v35 }
 0x36a   :  { %v2801_v40 = vpop.f32.mrb[44].mxu1  ;;  %v2845_v48 = vpop.f32.mrb[44].mxu0  ;;  %3294 = vmatprep.subr.bf16.mxu0 %v3293_v41 }
 0x36b   :  { %v1406_v49 = vpop.f32.mrb[45].mxu1  ;;  %v1535_v52 = vpop.f32.mrb[45].mxu0  ;;  %3296 = vmatpush3.bf16.msra.mxu0 %v3295_v1 }
 0x36c   :  { %v3297_v53 = vpack.c.bf16 %v2801_v40, %v1406_v49  ;;  %v3313_v54 = vpack.c.bf16 %v2845_v48, %v1535_v52 }
 0x36e   :  { %v2804_v20 = vpop.f32.mrb[46].mxu1  ;;  %v2848_v6 = vpop.f32.mrb[46].mxu0  ;;  %3298 = vmatprep.subr.bf16.mxu0 %v3297_v53 }
 0x36f   :  { %v1416_v55 = vpop.f32.mrb[47].mxu1  ;;  %v1545_v57 = vpop.f32.mrb[47].mxu0  ;;  %3300 = vmatpush3.bf16.msra.mxu0 %v3299_v47 }
 0x370   :  { %v3301_v34 = vpack.c.bf16 %v2804_v20, %v1416_v55  ;;  %v3317_v19 = vpack.c.bf16 %v2848_v6, %v1545_v57 }
 0x372   :  { %3302 = vmatprep.subr.bf16.mxu0 %v3301_v34 }
 0x373   :  { %3304 = vmatpush3.bf16.msra.mxu0 %v3303_v10 }
 0x374   :  { %3306 = vmatprep.subr.bf16.mxu0 %v3305_v25 }
 0x377   :  { %3308 = vmatpush3.bf16.msra.mxu0 %v3307_v17 }
 0x378   :  { %3310 = vmatprep.subr.bf16.mxu0 %v3309_v42 }
 0x37b   :  { %3312 = vmatpush3.bf16.msra.mxu0 %v3311_v62 }
 0x37c   :  { %3314 = vmatprep.subr.bf16.mxu0 %v3313_v54 }
 0x37f   :  { %3316 = vmatpush3.bf16.msra.mxu0 %v3315_v56 }
 0x380   :  { %3318 = vmatprep.subr.bf16.mxu0 %v3317_v19 }
 0x383   :  { %v2883_v9 = vpop.f32.mrb[48].mxu1  ;;  %3320 = vmatpush3.bf16.msra.mxu0 %v3319_v12 }
 0x384   :  { %v1644_v33 = vpop.f32.mrb[49].mxu1 }
 0x385   :  { %v3321_v58 = vpack.c.bf16 %v2883_v9, %v1644_v33 }
 0x386   :  { %1851 = vmatmul.mubr.f32.vlgmr.msra.gmra.mrb[48].mxu0 %v3626_v59 }
 0x387   :  { %v2886_v1 = vpop.f32.mrb[50].mxu1  ;;  %3322 = vmatprep.subr.bf16.mxu1 %v3321_v58  ;;  %1855 = vmatprep.mubr.f32.mxu0 %v3628_v61 }
 0x388   :  { %v1654_v60 = vpop.f32.mrb[51].mxu1  ;;  %3324 = vmatpush3.bf16.msra.mxu1 %v3321_v58 }
 0x389   :  { %v3325_v2 = vpack.c.bf16 %v2886_v1, %v1654_v60 }
 0x38a   :  { %1856 = vmatmul.mubr.f32.gmra.mrb[50].mxu0 %v3632_v63 }
 0x38b   :  { %v2889_v17 = vpop.f32.mrb[52].mxu1  ;;  %3326 = vmatprep.subr.bf16.mxu1 %v3325_v2  ;;  %1860 = vmatprep.mubr.f32.mxu0 %v3634_v5 }
 0x38c   :  { %v1664_v62 = vpop.f32.mrb[53].mxu1  ;;  %3328 = vmatpush3.bf16.msra.mxu1 %v3325_v2 }
 0x38d   :  { %v3329_v23 = vpack.c.bf16 %v2889_v17, %v1664_v62 }
 0x38e   :  { %1861 = vmatmul.mubr.f32.gmra.mrb[52].mxu0 %v3638_v11 }
 0x38f   :  { %v2892_v3 = vpop.f32.mrb[54].mxu1  ;;  %3330 = vmatprep.subr.bf16.mxu1 %v3329_v23  ;;  %1865 = vmatprep.mubr.f32.mxu0 %v3640_v13 }
 0x390   :  { %v1674_v59 = vpop.f32.mrb[55].mxu1  ;;  %3332 = vmatpush3.bf16.msra.mxu1 %v3329_v23 }
 0x391   :  { %v3333_v61 = vpack.c.bf16 %v2892_v3, %v1674_v59 }
 0x392   :  { %1866 = vmatmul.mubr.f32.gmra.mrb[54].mxu0 %v3644_v22 }
 0x393   :  { %3334 = vmatprep.subr.bf16.mxu1 %v3333_v61  ;;  %1870 = vmatprep.mubr.f32.mxu0 %v3646_v24 }
 0x394   :  { %3336 = vmatpush3.bf16.msra.mxu1 %v3333_v61 }
 0x396   :  { %1871 = vmatmul.mubr.f32.gmra.mrb[56].mxu0 %v3650_v29 }
 0x397   :  { %2910 = vmatmul.mubr.msk.f32.vlgmr.msra.gmra.mrb[56].mxu1 %vm803_vm0, %v3652_v30  ;;  %1875 = vmatprep.mubr.f32.mxu0 %v3654_v31 }
 0x398   :  { %2912 = vmatprep.mubr.msk.f32.mxu1 %vm803_vm0, %v3656_v32 }
 0x39a   :  { %1876 = vmatmul.mubr.f32.gmra.mrb[58].mxu0 %v3662_v36 }
 0x39b   :  { %2913 = vmatmul.mubr.msk.f32.gmra.mrb[58].mxu1 %vm803_vm0, %v3666_v37  ;;  %1880 = vmatprep.mubr.f32.mxu0 %v3668_v38  ;;  %v2032_v38 = vld [vmem:[%s3823_s5] ss:$0 sm:$0xff]  ;;  %s3476_s5 = smov [#allocation11]  }
 0x39c   :  { %2915 = vmatprep.mubr.msk.f32.mxu1 %vm803_vm0, %v3670_v39  ;;  %s2009_s27 = sshll.u32 %s3476_s5, 4  ;;  %s2010_s27 = int_to_ptr.vmem [resolvable:$true] %s2009_s27 }
 0x39d   :  { %s3436_s28 = scalar_lea.vmem %s2010_s27, 1024  ;;  %p3441_p5 = scmp.lt.s32.totalorder %s2010_s27, %s2010_s27 }
 0x39e   :  { %1881 = vmatmul.mubr.f32.gmra.mrb[60].mxu0 %v3676_v43  ;;  %p3437_p4 = scmp.ne.s32.totalorder %s2010_s27, %s3436_s28  ;;  %p3442_p6 = scmp.lt.s32.totalorder %s3436_s28, %s3436_s28 }
 0x39f   :  { %2916 = vmatmul.mubr.msk.f32.gmra.mrb[60].mxu1 %vm803_vm0, %v3680_v44  ;;  %1885 = vmatprep.mubr.f32.mxu0 %v3682_v45 }
 0x3a0   :  { %2918 = vmatprep.mubr.msk.f32.mxu1 %vm803_vm0, %v3684_v46  ;;  %p3443_p7 = por %p3442_p6, %p3441_p5 }
 0x3a2   :  { %1886 = vmatmul.mubr.f32.gmra.mrb[62].mxu0 %v3690_v50  ;;  %p3444_p8 = pnand %p3443_p7, %p3437_p4 }
 0x3a3   :  { %2919 = vmatmul.mubr.msk.f32.gmra.mrb[62].mxu1 %vm803_vm0, %v3694_v51 }
 0x459   :  { %v2385_v63 = vpop.f32.mrb[48].mxu0 }
 0x45a   :  { %v2386_v5 = vpop.f32.mrb[49].mxu0 }
 0x45b   :  { %v2387_v11 = vadd.f32 %v2386_v5, %v2385_v63 }
 0x45d   :  { %v2388_v13 = vpop.f32.mrb[50].mxu0  ;;  %v1853_v46 = vadd.f32 %v2387_v11, %v2032_v38 }
 0x45e   :  { %v2389_v22 = vpop.f32.mrb[51].mxu0 }
 0x45f   :  { %v2390_v24 = vadd.f32 %v2389_v22, %v2388_v13 }
 0x461   :  { %v2391_v29 = vpop.f32.mrb[52].mxu0  ;;  %v1858_v43 = vadd.f32 %v2390_v24, %v2032_v38 }
 0x462   :  { %v2392_v30 = vpop.f32.mrb[53].mxu0 }
 0x463   :  { %v2393_v31 = vadd.f32 %v2392_v30, %v2391_v29 }
 0x465   :  { %v2394_v32 = vpop.f32.mrb[54].mxu0  ;;  %v1863_v10 = vadd.f32 %v2393_v31, %v2032_v38 }
 0x466   :  { %v2395_v36 = vpop.f32.mrb[55].mxu0 }
 0x467   :  { %v2396_v37 = vadd.f32 %v2395_v36, %v2394_v32 }
 0x469   :  { %v2397_v39 = vpop.f32.mrb[56].mxu0  ;;  %v1868_v4 = vadd.f32 %v2396_v37, %v2032_v38 }
 0x46a   :  { %v2911_v44 = vpop.f32.mrb[56].mxu1  ;;  %v2398_v45 = vpop.f32.mrb[57].mxu0 }
 0x46b   :  { %v1963_v50 = vadd.f32 %v2911_v44, %v1858_v43  ;;  %v2399_v51 = vadd.f32 %v2398_v45, %v2397_v39  ;;  %v1957_v47 = vpop.f32.mrb[57].mxu1 }
 0x46c   :  { %v1958_v56 = vadd.f32 %v1957_v47, %v1853_v46 }
 0x46d   :  { %1997 = vst [vmem:[#allocation11 + $0x8] sm:$0xff] %v1963_v50  ;;  %v2400_v0 = vpop.f32.mrb[58].mxu0  ;;  %v1873_v27 = vadd.f32 %v2399_v51, %v2032_v38 }
 0x46e   :  { %1996 = vst [vmem:[#allocation11] sm:$0xff] %v1958_v56  ;;  %v2914_v7 = vpop.f32.mrb[58].mxu1  ;;  %v2401_v8 = vpop.f32.mrb[59].mxu0 }
 0x46f   :  { %v1973_v12 = vadd.f32 %v2914_v7, %v1868_v4  ;;  %v2402_v14 = vadd.f32 %v2401_v8, %v2400_v0  ;;  %v1967_v15 = vpop.f32.mrb[59].mxu1 }
 0x470   :  { %v1968_v16 = vadd.f32 %v1967_v15, %v1863_v10 }
 0x471   :  { %1999 = vst [vmem:[#allocation11 + $0x18] sm:$0xff] %v1973_v12  ;;  %v2403_v18 = vpop.f32.mrb[60].mxu0  ;;  %v1878_v21 = vadd.f32 %v2402_v14, %v2032_v38 }
 0x472   :  { %1998 = vst [vmem:[#allocation11 + $0x10] sm:$0xff] %v1968_v16  ;;  %v2917_v25 = vpop.f32.mrb[60].mxu1  ;;  %v2404_v26 = vpop.f32.mrb[61].mxu0 }
 0x473   :  { %v1983_v28 = vadd.f32 %v2917_v25, %v1878_v21  ;;  %v2405_v35 = vadd.f32 %v2404_v26, %v2403_v18  ;;  %v1977_v41 = vpop.f32.mrb[61].mxu1 }
 0x474   :  { %v1978_v42 = vadd.f32 %v1977_v41, %v1873_v27 }
 0x475   :  { %2001 = vst [vmem:[#allocation11 + $0x28] sm:$0xff] %v1983_v28  ;;  %v2406_v40 = vpop.f32.mrb[62].mxu0  ;;  %v1883_v48 = vadd.f32 %v2405_v35, %v2032_v38 }
 0x476   :  { %2000 = vst [vmem:[#allocation11 + $0x20] sm:$0xff] %v1978_v42  ;;  %v2920_v49 = vpop.f32.mrb[62].mxu1  ;;  %v2407_v52 = vpop.f32.mrb[63].mxu0 }
 0x477   :  { %v2408_v53 = vadd.f32 %v2407_v52, %v2406_v40  ;;  %v1987_v54 = vpop.f32.mrb[63].mxu1 }
 0x478   :  { %v1988_v20 = vadd.f32 %v1987_v54, %v1883_v48 }
 0x479   :  { %v1888_v6 = vadd.f32 %v2408_v53, %v2032_v38 }
 0x47a   :  { %2002 = vst [vmem:[#allocation11 + $0x30] sm:$0xff] %v1988_v20 }
 0x47b   :  { %v1993_v55 = vadd.f32 %v2920_v49, %v1888_v6 }
 0x47d   :  { %2003 = vst [vmem:[#allocation11 + $0x38] sm:$0xff] %v1993_v55 }
 0x47e   :  { %3447 = shalt.err (!%p3444_p8)
}
 0x47f   :  { %s3448_s9 = scalar_lea.hbm %s3824_s6, 1024 }
 0x480   :  { %p3449_p9 = scmp.ne.s32.totalorder %s3824_s6, %s3448_s9  ;;  %p3452_p10 = scmp.lt.u32.totalorder %s3448_s9, %s3824_s6 }
 0x482   :  { %p3454_p11 = pnand %p3452_p10, %p3449_p9 }
 0x484   :  { %3457 = shalt.err (!%p3454_p11)
}
 0x485   :  { %2015 = dma.vmem_to_hbm [thread:$0]  %s2010_s27, 1024, %s3824_s6, [#allocation5], %s3467_s7, %s3467_s7, %s3468_s8  }
 0x486   :  { %3464 = dma.done.wait [#allocation5], 1024  }
 0x487   :  { %3465 = vsyncadd [#allocation5], 4294966272 }
 0x488   :  { %2019 = vsyncpa [#allocation4], 1 }
 0x489   :  { %2020 = vsyncpa [#allocation7], 1 }
 0x48a   :  { %2021 = vsyncpa [#allocation10], 1 }
 0x48b   :  { %2022 = vsyncpa [#allocation5], 1 }

</bundles_post_ra>
